<compile_context>
chip_gen: v6e
topology: v6e:2x2x1
jax: 0.10.0
libtpu: 0.0.40
codegen_flags: <defaults>
</compile_context>

<pallas_src>
import functools

import jax
import jax.numpy as jnp
from jax.experimental import pallas as pl
from jax.experimental.pallas import tpu as pltpu


def _round_up(x, m):
    return (x + m - 1) // m * m


# ----------------------------------------------------------------------------
# Kernel: grid = (batch_tiles, time_chunks).  The time-chunk axis carries the
# GRU recurrence (sequential, "arbitrary"); batch tiles are independent
# ("parallel", shardable across TensorCores on v7x).
# ----------------------------------------------------------------------------
def _gru_chunk_kernel(len_ref, emb_ref, w_i_ref, b_i_ref, w_h_ref, b_h_ref,
                      out_ref, hid_ref, h_scr, *, mxu_dtype):
    c = pl.program_id(1)                       # time-chunk index (sequential axis)
    T, b_tile, H_in = emb_ref.shape
    Hp = h_scr.shape[-1]
    G = 3 * Hp

    @pl.when(c == 0)
    def _():                                   # new batch tile -> reset carried state
        h_scr[...] = jnp.zeros_like(h_scr)

    # ---- loop-invariant work, hoisted off the serial recurrence ----
    # Input projection for the whole chunk: ONE bf16 GEMM with f32 accumulation.
    emb = emb_ref[...].reshape(T * b_tile, H_in).astype(mxu_dtype)
    gx_chunk = jnp.dot(emb, w_i_ref[...],
                       preferred_element_type=jnp.float32) + b_i_ref[...]
    # JAX does not CSE broadcast_in_dim: pre-broadcast the recurrent bias
    # ([0 | 0 | b_hn]) and the per-row length threshold once per chunk.
    bh = jnp.broadcast_to(b_h_ref[...], (b_tile, G))
    len_b = jnp.broadcast_to(len_ref[...], (b_tile, Hp))      # int32
    w_h = w_h_ref[...]
    h = h_scr[...]

    # ---- serial GRU recurrence over the chunk (fully unrolled, static indices) ----
    # TODO(synk): for tiny b_tile, drive the MXU explicitly (pltpu.matmul_push_rhs
    # once per chunk + matmul_acc_lhs per step) to keep W_h resident in the array.
    for i in range(T):
        t = c * T + i
        gx = gx_chunk[i * b_tile:(i + 1) * b_tile, :]            # (b_tile, 3Hp) f32
        gh = jnp.dot(h.astype(mxu_dtype), w_h,
                     preferred_element_type=jnp.float32) + bh    # (b_tile, 3Hp) f32
        r = jax.nn.sigmoid(gx[:, :Hp] + gh[:, :Hp])
        z = jax.nn.sigmoid(gx[:, Hp:2 * Hp] + gh[:, Hp:2 * Hp])
        n = jnp.tanh(gx[:, 2 * Hp:] + r * gh[:, 2 * Hp:])
        h_new = (1.0 - z) * n + z * h
        valid = t < len_b                                        # (b_tile, Hp) bool
        out_ref[:, i, :] = jnp.where(valid, h_new, 0.0)          # pad_packed zeros
        h = jnp.where(valid, h_new, h)                           # freeze past length

    h_scr[...] = h

    @pl.when(c == pl.num_programs(1) - 1)
    def _():                                   # final hidden state, once per batch tile
        hid_ref[0] = h


# ----------------------------------------------------------------------------
# Parameter fusing / padding.
# ----------------------------------------------------------------------------
def _fuse_gru_params(params, H, Hp, mxu_dtype):
    """Fuse per-gate weights into [r|z|n] blocks, zero-padded to Hp lanes.

    b_hr/b_hz are folded into the input-side bias (they are added in the same sum
    as the input projection for the r/z gates); only b_hn stays on the recurrent
    side because n = tanh(gx_n + r*(h@W_hn + b_hn)).
    Zero padding keeps padded hidden lanes identically zero through the recurrence.
    """
    def pad_cols(w):   # (H, H) -> (H, Hp)
        return jnp.pad(w, ((0, 0), (0, Hp - H)))

    def pad_both(w):   # (H, H) -> (Hp, Hp)
        return jnp.pad(w, ((0, Hp - H), (0, Hp - H)))

    def pad_bias(b):   # (H,) -> (Hp,)
        return jnp.pad(b, (0, Hp - H))

    w_i = jnp.concatenate([pad_cols(params[k]) for k in ("w_ir", "w_iz", "w_in")],
                          axis=1)
    b_i = jnp.concatenate([pad_bias(params["b_ir"] + params["b_hr"]),
                           pad_bias(params["b_iz"] + params["b_hz"]),
                           pad_bias(params["b_in"])])[None, :]
    w_h = jnp.concatenate([pad_both(params[k]) for k in ("w_hr", "w_hz", "w_hn")],
                          axis=1)
    b_h = jnp.concatenate([jnp.zeros((2 * Hp,), jnp.float32),
                           pad_bias(params["b_hn"])])[None, :]
    return (w_i.astype(mxu_dtype), b_i.astype(jnp.float32),
            w_h.astype(mxu_dtype), b_h.astype(jnp.float32))


def _vmem_bytes_estimate(chunk, b_tile, H, Hp, mxu_bytes):
    G = 3 * Hp
    est = 0
    est += 2 * chunk * b_tile * H * 4           # embedding stream (f32, double buffered)
    est += 2 * b_tile * chunk * Hp * 4          # encoder-output stream
    est += 2 * (H * G + Hp * G) * mxu_bytes     # fused weights (resident)
    est += 2 * 2 * G * 4                        # fused biases
    est += 2 * b_tile * 4                       # lengths
    est += 2 * b_tile * Hp * 4                  # final-hidden output block
    est += b_tile * Hp * 4                      # h scratch
    est += chunk * b_tile * G * 4               # in-kernel gx_chunk value
    est += 8 * b_tile * G * 4                   # per-step temporaries headroom
    return est


# ----------------------------------------------------------------------------
# pallas_call wrapper.
# ----------------------------------------------------------------------------
def gru_encoder_pallas(emb_tm, lengths_p, w_i, b_i, w_h, b_h, *,
                       chunk, batch_tile, mxu_dtype):
    """emb_tm: (Sp, Bp, H) f32 time-major embeddings, lengths_p: (Bp, 1) int32."""
    Sp, Bp, H = emb_tm.shape
    Hp = w_h.shape[0]
    G = 3 * Hp
    n_chunks = Sp // chunk
    n_btiles = Bp // batch_tile

    kernel = functools.partial(_gru_chunk_kernel, mxu_dtype=mxu_dtype)

    in_specs = [
        pl.BlockSpec((batch_tile, 1), lambda b, c: (b, 0)),            # lengths
        pl.BlockSpec((chunk, batch_tile, H), lambda b, c: (c, b, 0)),  # embeddings
        pl.BlockSpec((H, G), lambda b, c: (0, 0)),                     # fused W_i (resident)
        pl.BlockSpec((1, G), lambda b, c: (0, 0)),                     # fused b_i
        pl.BlockSpec((Hp, G), lambda b, c: (0, 0)),                    # fused W_h (resident)
        pl.BlockSpec((1, G), lambda b, c: (0, 0)),                     # fused b_h
    ]
    out_specs = [
        # Batch-major encoder outputs: no post-kernel (S,B,H)->(B,S,H) transpose.
        pl.BlockSpec((batch_tile, chunk, Hp), lambda b, c: (b, c, 0)),
        pl.BlockSpec((1, batch_tile, Hp), lambda b, c: (0, b, 0)),     # final hidden
    ]
    out_shape = (
        jax.ShapeDtypeStruct((Bp, Sp, Hp), jnp.float32),
        jax.ShapeDtypeStruct((1, Bp, Hp), jnp.float32),
    )
    mxu_bytes = jnp.dtype(mxu_dtype).itemsize
    vmem_limit = int(min(
        max(2 * _vmem_bytes_estimate(chunk, batch_tile, H, Hp, mxu_bytes) + (2 << 20),
            16 << 20),
        64 << 20))   # never exceed v7x physical VMEM per core

    return pl.pallas_call(
        kernel,
        grid=(n_btiles, n_chunks),
        in_specs=in_specs,
        out_specs=out_specs,
        out_shape=out_shape,
        scratch_shapes=[pltpu.VMEM((batch_tile, Hp), jnp.float32)],
        compiler_params=pltpu.CompilerParams(
            # batch tiles are independent (shardable across v7x's two TensorCores);
            # the time-chunk axis carries the recurrence and must stay sequential.
            dimension_semantics=("parallel", "arbitrary"),
            vmem_limit_bytes=vmem_limit),
    )(lengths_p, emb_tm, w_i, b_i, w_h, b_h)


# ----------------------------------------------------------------------------
# Full module forward (embedding gather + GRU kernel + mask).
# ----------------------------------------------------------------------------
@functools.partial(jax.jit, static_argnames=("chunk", "batch_tile", "mxu_dtype"))
def encoder_forward(tokens, lengths, embedding, params, *,
                    chunk=16, batch_tile=None, mxu_dtype=jnp.bfloat16):
    """
    tokens:  (B, S) int32;  lengths: (B,) int32.
    Assumes max(lengths) == S (the batch is padded to its own max length, which is
    what pad_packed_sequence returns).  # TODO(synk): dynamic max-length trimming.
    Returns encoder_outputs (B,S,H) f32, hidden (1,B,H) f32, mask (B,S) bool.
    """
    B, S = tokens.shape
    H = embedding.shape[1]
    Hp = _round_up(H, 128)     # lane axis: full vregs, unmasked loads/stores
    Bp = _round_up(B, 8)       # sublane axis
    Sp = _round_up(S, chunk)
    if batch_tile is None:
        batch_tile = Bp
    assert Bp % batch_tile == 0 and batch_tile % 8 == 0

    w_i, b_i, w_h, b_h = _fuse_gru_params(params, H, Hp, mxu_dtype)

    # Time-major embedded inputs: only the tiny (B,S) int matrix is transposed.
    # The input projection happens inside the kernel (one GEMM per chunk), so no
    # (Sp,Bp,3Hp) HBM intermediate is ever materialized.
    tokens_tm = jnp.pad(tokens.T.astype(jnp.int32), ((0, Sp - S), (0, Bp - B)))
    emb_tm = jnp.take(embedding.astype(jnp.float32), tokens_tm, axis=0)   # (Sp,Bp,H)

    lengths_p = jnp.pad(lengths.astype(jnp.int32), (0, Bp - B)).reshape(Bp, 1)

    outs_bm, hid = gru_encoder_pallas(emb_tm, lengths_p, w_i, b_i, w_h, b_h,
                                      chunk=chunk, batch_tile=batch_tile,
                                      mxu_dtype=mxu_dtype)

    encoder_outputs = outs_bm[:B, :S, :H]      # already batch-major: no transpose
    hidden = hid[:, :B, :H]
    mask = jnp.arange(S)[None, :] < lengths[:, None]
    return encoder_outputs, hidden, mask


# ----------------------------------------------------------------------------
# Pure-JAX reference (lax.scan GRU, per-gate weights).  `operand_dtype` optionally
# rounds every matmul operand the way the kernel's MXU path does (bf16 operands,
# f32 accumulation) so the kernel can be checked with a tight tolerance.
# ----------------------------------------------------------------------------
def encoder_forward_ref(tokens, lengths, embedding, params,
                        operand_dtype=jnp.float32):
    B, S = tokens.shape
    H = embedding.shape[1]

    def mm(a, b):
        return jnp.dot(a.astype(operand_dtype), b.astype(operand_dtype),
                       preferred_element_type=jnp.float32,
                       precision=jax.lax.Precision.HIGHEST)

    embedded = jnp.take(embedding, tokens, axis=0).astype(jnp.float32)
    x_tm = jnp.transpose(embedded, (1, 0, 2))

    def step(h, inp):
        x_t, t = inp
        r = jax.nn.sigmoid(mm(x_t, params["w_ir"]) + params["b_ir"]
                           + mm(h, params["w_hr"]) + params["b_hr"])
        z = jax.nn.sigmoid(mm(x_t, params["w_iz"]) + params["b_iz"]
                           + mm(h, params["w_hz"]) + params["b_hz"])
        n = jnp.tanh(mm(x_t, params["w_in"]) + params["b_in"]
                     + r * (mm(h, params["w_hn"]) + params["b_hn"]))
        h_new = (1.0 - z) * n + z * h
        valid = (t < lengths)[:, None].astype(jnp.float32)
        h_next = valid * h_new + (1.0 - valid) * h
        return h_next, valid * h_new

    h0 = jnp.zeros((B, H), jnp.float32)
    h_last, outs = jax.lax.scan(step, h0, (x_tm, jnp.arange(S)))
    enc = jnp.transpose(outs, (1, 0, 2))
    mask = jnp.arange(S)[None, :] < lengths[:, None]
    return enc, h_last[None], mask


if __name__ == "__main__":
    VOCAB = 16   # input_size (vocabulary)
    H = 32       # hidden_size
    B = 2        # batch
    S = 12       # padded sequence length (== max(lengths))
    PAD = 0

    key = jax.random.PRNGKey(0)
    keys = jax.random.split(key, 16)
    scale = 1.0 / jnp.sqrt(jnp.float32(H))

    # Embedding table; padding_idx row forced to zero (nn.Embedding(padding_idx=0)).
    embedding = jax.random.normal(keys[0], (VOCAB, H), jnp.float32)
    embedding = embedding.at[PAD].set(0.0)

    # GRU parameters (PyTorch weight_ih/hh split into r, z, n gates, pre-transposed).
    names = ["w_ir", "w_iz", "w_in", "w_hr", "w_hz", "w_hn",
             "b_ir", "b_iz", "b_in", "b_hr", "b_hz", "b_hn"]
    params = {}
    for i, name in enumerate(names):
        shp = (H, H) if name.startswith("w") else (H,)
        params[name] = jax.random.uniform(keys[1 + i], shp, jnp.float32,
                                          minval=-scale, maxval=scale)

    # Variable-length sequences; tokens past each length are PAD (=0).
    lengths = jnp.array([S, S - 3], dtype=jnp.int32)        # max(lengths) == S
    tokens = jax.random.randint(keys[15], (B, S), 1, VOCAB, dtype=jnp.int32)
    pad_mask = jnp.arange(S)[None, :] < lengths[:, None]
    tokens = jnp.where(pad_mask, tokens, PAD)

    # References: exact f32, plus one with bf16-rounded matmul operands that
    # mirrors the kernel's MXU path (bf16 operands, f32 accumulation).
    enc_f32, hid_f32, mask_ref = encoder_forward_ref(tokens, lengths, embedding, params)
    enc_bf, hid_bf, _ = encoder_forward_ref(tokens, lengths, embedding, params,
                                            operand_dtype=jnp.bfloat16)

    # Run 1: chunk=8 -> two time chunks (exercises the sequential chunk axis,
    # time padding Sp=16 and batch padding Bp=8), bf16 MXU operands.
    enc1, hid1, mask1 = encoder_forward(tokens, lengths, embedding, params, chunk=8)
    jax.block_until_ready((enc1, hid1, mask1))
    assert enc1.shape == (B, S, H) and hid1.shape == (1, B, H) and mask1.shape == (B, S)
    assert jnp.allclose(enc1, enc_bf, atol=5e-3), "encoder_outputs mismatch (chunk=8)"
    assert jnp.allclose(hid1, hid_bf, atol=5e-3), "hidden mismatch (chunk=8)"
    assert jnp.array_equal(mask1, mask_ref), "mask mismatch (chunk=8)"

    # Run 2: default perf config (chunk=16, bf16 MXU operands).
    enc2, hid2, mask2 = encoder_forward(tokens, lengths, embedding, params)
    jax.block_until_ready((enc2, hid2, mask2))
    assert jnp.allclose(enc2, enc_bf, atol=5e-3), "encoder_outputs mismatch (default)"
    assert jnp.allclose(hid2, hid_bf, atol=5e-3), "hidden mismatch (default)"
    assert jnp.array_equal(mask2, mask_ref), "mask mismatch (default)"
    # Sanity bound vs. the exact-f32 reference (difference is bf16 operand rounding only).
    assert jnp.allclose(enc2, enc_f32, atol=2.5e-1), "bf16 drift vs f32 reference (outputs)"
    assert jnp.allclose(hid2, hid_f32, atol=2.5e-1), "bf16 drift vs f32 reference (hidden)"

    # Run 3: f32 MXU operands (reference-fidelity mode).  Loose tolerance covers
    # either exact-f32 or bf16-pass lowering of f32 matmuls inside Mosaic.
    enc3, hid3, mask3 = encoder_forward(tokens, lengths, embedding, params,
                                        chunk=8, mxu_dtype=jnp.float32)
    jax.block_until_ready((enc3, hid3, mask3))
    assert jnp.allclose(enc3, enc_f32, atol=1e-1), "encoder_outputs mismatch (f32)"
    assert jnp.allclose(hid3, hid_f32, atol=1e-1), "hidden mismatch (f32)"
    assert jnp.array_equal(mask3, mask_ref), "mask mismatch (f32)"

    print("KERNEL_OK")
</pallas_src>

<mosaic_0001>
module attributes {stable_mosaic.version = 11 : i64} {
  func.func @_gru_chunk_kernel(%arg0: i32, %arg1: i32, %arg2: memref<8x1xi32, #tpu.memory_space<vmem>>, %arg3: memref<8x8x32xf32, #tpu.memory_space<vmem>>, %arg4: memref<32x384xbf16, #tpu.memory_space<vmem>>, %arg5: memref<1x384xf32, #tpu.memory_space<vmem>>, %arg6: memref<128x384xbf16, #tpu.memory_space<vmem>>, %arg7: memref<1x384xf32, #tpu.memory_space<vmem>>, %arg8: memref<8x8x128xf32, #tpu.memory_space<vmem>>, %arg9: memref<1x8x128xf32, #tpu.memory_space<vmem>>, %arg10: memref<8x128xf32, #tpu.memory_space<vmem>>) attributes {dimension_semantics = [#tpu.dimension_semantics<parallel>, #tpu.dimension_semantics<arbitrary>], iteration_bounds = array<i64: 1, 2>, scalar_prefetch = 0 : i64, scratch_operands = 1 : i64, tpu.core_type = #tpu.core_type<tc>, window_params = [{transform_indices = @transform_0, window_bounds = array<i64: 8, 1>}, {transform_indices = @transform_1, window_bounds = array<i64: 8, 8, 32>}, {pipeline_mode = #tpu.pipeline_mode<synchronous>, transform_indices = @transform_2, window_bounds = array<i64: 32, 384>}, {pipeline_mode = #tpu.pipeline_mode<synchronous>, transform_indices = @transform_3, window_bounds = array<i64: 1, 384>}, {pipeline_mode = #tpu.pipeline_mode<synchronous>, transform_indices = @transform_4, window_bounds = array<i64: 128, 384>}, {pipeline_mode = #tpu.pipeline_mode<synchronous>, transform_indices = @transform_5, window_bounds = array<i64: 1, 384>}, {transform_indices = @transform_6, window_bounds = array<i64: 8, 8, 128>}, {transform_indices = @transform_7, window_bounds = array<i64: 1, 8, 128>}]} {
    %c0_i32 = arith.constant 0 : i32
    %0 = arith.cmpi eq, %arg1, %c0_i32 : i32
    %1 = arith.extui %0 : i1 to i32
    %c0_i32_0 = arith.constant 0 : i32
    %2 = arith.cmpi ne, %1, %c0_i32_0 : i32
    scf.if %2 {
      %cst_84 = arith.constant 0.000000e+00 : f32
      %343 = vector.broadcast %cst_84 : f32 to vector<8x128xf32>
      %c0_85 = arith.constant 0 : index
      %c0_86 = arith.constant 0 : index
      %344 = vector.load %arg10[%c0_85, %c0_86] : memref<8x128xf32, #tpu.memory_space<vmem>>, vector<8x128xf32>
      tpu.vector_store %arg10[%c0_85, %c0_86], %343 {strides = array<i32>} : memref<8x128xf32, #tpu.memory_space<vmem>>, vector<8x128xf32>,
    } else {
    }
    %c0 = arith.constant 0 : index
    %c0_1 = arith.constant 0 : index
    %c0_2 = arith.constant 0 : index
    %3 = vector.load %arg3[%c0, %c0_1, %c0_2] : memref<8x8x32xf32, #tpu.memory_space<vmem>>, vector<8x8x32xf32>
    %4 = vector.shape_cast %3 : vector<8x8x32xf32> to vector<64x32xf32>
    %5 = arith.truncf %4 : vector<64x32xf32> to vector<64x32xbf16>
    %c0_3 = arith.constant 0 : index
    %c0_4 = arith.constant 0 : index
    %6 = vector.load %arg4[%c0_3, %c0_4] : memref<32x384xbf16, #tpu.memory_space<vmem>>, vector<32x384xbf16>
    %cst = arith.constant dense<0.000000e+00> : vector<64x384xf32>
    %7 = tpu.matmul %5, %6, %cst {dimension_numbers = #tpu.dot_dimension_numbers<[1], [0], [0], [1], [0, 0, 1, 1], [], []>} : vector<64x32xbf16>, vector<32x384xbf16>, vector<64x384xf32> -> vector<64x384xf32>
    %c0_5 = arith.constant 0 : index
    %c0_6 = arith.constant 0 : index
    %8 = vector.load %arg5[%c0_5, %c0_6] : memref<1x384xf32, #tpu.memory_space<vmem>>, vector<1x384xf32>
    %9 = vector.broadcast %8 : vector<1x384xf32> to vector<64x384xf32>
    %10 = arith.addf %7, %9 : vector<64x384xf32>
    %c0_7 = arith.constant 0 : index
    %c0_8 = arith.constant 0 : index
    %11 = vector.load %arg7[%c0_7, %c0_8] : memref<1x384xf32, #tpu.memory_space<vmem>>, vector<1x384xf32>
    %12 = vector.shape_cast %11 : vector<1x384xf32> to vector<1x384xf32>
    %13 = vector.broadcast %12 : vector<1x384xf32> to vector<8x384xf32>
    %c0_9 = arith.constant 0 : index
    %c0_10 = arith.constant 0 : index
    %14 = vector.load %arg2[%c0_9, %c0_10] : memref<8x1xi32, #tpu.memory_space<vmem>>, vector<8x1xi32>
    %15 = vector.shape_cast %14 : vector<8x1xi32> to vector<8x1xi32>
    %16 = vector.broadcast %15 : vector<8x1xi32> to vector<8x128xi32>
    %c0_11 = arith.constant 0 : index
    %c0_12 = arith.constant 0 : index
    %17 = vector.load %arg6[%c0_11, %c0_12] : memref<128x384xbf16, #tpu.memory_space<vmem>>, vector<128x384xbf16>
    %c0_13 = arith.constant 0 : index
    %c0_14 = arith.constant 0 : index
    %18 = vector.load %arg10[%c0_13, %c0_14] : memref<8x128xf32, #tpu.memory_space<vmem>>, vector<8x128xf32>
    %c8_i32 = arith.constant 8 : i32
    %19 = arith.muli %arg1, %c8_i32 : i32
    %c0_i32_15 = arith.constant 0 : i32
    %20 = arith.addi %19, %c0_i32_15 : i32
    %21 = vector.extract_strided_slice %10 {offsets = [0, 0], sizes = [8, 384], strides = [1, 1]} : vector<64x384xf32> to vector<8x384xf32>
    %22 = arith.truncf %18 : vector<8x128xf32> to vector<8x128xbf16>
    %cst_16 = arith.constant dense<0.000000e+00> : vector<8x384xf32>
    %23 = tpu.matmul %22, %17, %cst_16 {dimension_numbers = #tpu.dot_dimension_numbers<[1], [0], [0], [1], [0, 0, 1, 1], [], []>} : vector<8x128xbf16>, vector<128x384xbf16>, vector<8x384xf32> -> vector<8x384xf32>
    %24 = arith.addf %23, %13 : vector<8x384xf32>
    %25 = vector.extract_strided_slice %21 {offsets = [0, 0], sizes = [8, 128], strides = [1, 1]} : vector<8x384xf32> to vector<8x128xf32>
    %26 = vector.extract_strided_slice %24 {offsets = [0, 0], sizes = [8, 128], strides = [1, 1]} : vector<8x384xf32> to vector<8x128xf32>
    %27 = arith.addf %25, %26 : vector<8x128xf32>
    %28 = arith.negf %27 : vector<8x128xf32>
    %29 = math.exp %28 : vector<8x128xf32>
    %cst_17 = arith.constant 1.000000e+00 : f32
    %30 = vector.broadcast %cst_17 : f32 to vector<8x128xf32>
    %31 = arith.addf %30, %29 : vector<8x128xf32>
    %32 = arith.divf %30, %31 : vector<8x128xf32>
    %33 = vector.extract_strided_slice %21 {offsets = [0, 128], sizes = [8, 128], strides = [1, 1]} : vector<8x384xf32> to vector<8x128xf32>
    %34 = vector.extract_strided_slice %24 {offsets = [0, 128], sizes = [8, 128], strides = [1, 1]} : vector<8x384xf32> to vector<8x128xf32>
    %35 = arith.addf %33, %34 : vector<8x128xf32>
    %36 = arith.negf %35 : vector<8x128xf32>
    %37 = math.exp %36 : vector<8x128xf32>
    %cst_18 = arith.constant 1.000000e+00 : f32
    %38 = vector.broadcast %cst_18 : f32 to vector<8x128xf32>
    %39 = arith.addf %38, %37 : vector<8x128xf32>
    %40 = arith.divf %38, %39 : vector<8x128xf32>
    %41 = vector.extract_strided_slice %21 {offsets = [0, 256], sizes = [8, 128], strides = [1, 1]} : vector<8x384xf32> to vector<8x128xf32>
    %42 = vector.extract_strided_slice %24 {offsets = [0, 256], sizes = [8, 128], strides = [1, 1]} : vector<8x384xf32> to vector<8x128xf32>
    %43 = arith.mulf %32, %42 : vector<8x128xf32>
    %44 = arith.addf %41, %43 : vector<8x128xf32>
    %45 = math.tanh %44 : vector<8x128xf32>
    %cst_19 = arith.constant 1.000000e+00 : f32
    %46 = vector.broadcast %cst_19 : f32 to vector<8x128xf32>
    %47 = arith.subf %46, %40 : vector<8x128xf32>
    %48 = arith.mulf %47, %45 : vector<8x128xf32>
    %49 = arith.mulf %40, %18 : vector<8x128xf32>
    %50 = arith.addf %48, %49 : vector<8x128xf32>
    %51 = vector.broadcast %20 : i32 to vector<8x128xi32>
    %52 = arith.cmpi slt, %51, %16 : vector<8x128xi32>
    %cst_20 = arith.constant 0.000000e+00 : f32
    %53 = vector.broadcast %cst_20 : f32 to vector<8x128xf32>
    %54 = arith.select %52, %50, %53 : vector<8x128xi1>, vector<8x128xf32>
    %c0_21 = arith.constant 0 : index
    %c0_22 = arith.constant 0 : index
    %c0_23 = arith.constant 0 : index
    %55 = vector.load %arg8[%c0_21, %c0_22, %c0_23] : memref<8x8x128xf32, #tpu.memory_space<vmem>>, vector<8x1x128xf32>
    %56 = vector.shape_cast %55 : vector<8x1x128xf32> to vector<8x128xf32>
    %57 = vector.shape_cast %54 : vector<8x128xf32> to vector<8x1x128xf32>
    tpu.vector_store %arg8[%c0_21, %c0_22, %c0_23], %57 {strides = array<i32>} : memref<8x8x128xf32, #tpu.memory_space<vmem>>, vector<8x1x128xf32>,
    %58 = arith.select %52, %50, %18 : vector<8x128xi1>, vector<8x128xf32>
    %c8_i32_24 = arith.constant 8 : i32
    %59 = arith.muli %arg1, %c8_i32_24 : i32
    %c1_i32 = arith.constant 1 : i32
    %60 = arith.addi %59, %c1_i32 : i32
    %61 = vector.extract_strided_slice %10 {offsets = [8, 0], sizes = [8, 384], strides = [1, 1]} : vector<64x384xf32> to vector<8x384xf32>
    %62 = arith.truncf %58 : vector<8x128xf32> to vector<8x128xbf16>
    %cst_25 = arith.constant dense<0.000000e+00> : vector<8x384xf32>
    %63 = tpu.matmul %62, %17, %cst_25 {dimension_numbers = #tpu.dot_dimension_numbers<[1], [0], [0], [1], [0, 0, 1, 1], [], []>} : vector<8x128xbf16>, vector<128x384xbf16>, vector<8x384xf32> -> vector<8x384xf32>
    %64 = arith.addf %63, %13 : vector<8x384xf32>
    %65 = vector.extract_strided_slice %61 {offsets = [0, 0], sizes = [8, 128], strides = [1, 1]} : vector<8x384xf32> to vector<8x128xf32>
    %66 = vector.extract_strided_slice %64 {offsets = [0, 0], sizes = [8, 128], strides = [1, 1]} : vector<8x384xf32> to vector<8x128xf32>
    %67 = arith.addf %65, %66 : vector<8x128xf32>
    %68 = arith.negf %67 : vector<8x128xf32>
    %69 = math.exp %68 : vector<8x128xf32>
    %cst_26 = arith.constant 1.000000e+00 : f32
    %70 = vector.broadcast %cst_26 : f32 to vector<8x128xf32>
    %71 = arith.addf %70, %69 : vector<8x128xf32>
    %72 = arith.divf %70, %71 : vector<8x128xf32>
    %73 = vector.extract_strided_slice %61 {offsets = [0, 128], sizes = [8, 128], strides = [1, 1]} : vector<8x384xf32> to vector<8x128xf32>
    %74 = vector.extract_strided_slice %64 {offsets = [0, 128], sizes = [8, 128], strides = [1, 1]} : vector<8x384xf32> to vector<8x128xf32>
    %75 = arith.addf %73, %74 : vector<8x128xf32>
    %76 = arith.negf %75 : vector<8x128xf32>
    %77 = math.exp %76 : vector<8x128xf32>
    %cst_27 = arith.constant 1.000000e+00 : f32
    %78 = vector.broadcast %cst_27 : f32 to vector<8x128xf32>
    %79 = arith.addf %78, %77 : vector<8x128xf32>
    %80 = arith.divf %78, %79 : vector<8x128xf32>
    %81 = vector.extract_strided_slice %61 {offsets = [0, 256], sizes = [8, 128], strides = [1, 1]} : vector<8x384xf32> to vector<8x128xf32>
    %82 = vector.extract_strided_slice %64 {offsets = [0, 256], sizes = [8, 128], strides = [1, 1]} : vector<8x384xf32> to vector<8x128xf32>
    %83 = arith.mulf %72, %82 : vector<8x128xf32>
    %84 = arith.addf %81, %83 : vector<8x128xf32>
    %85 = math.tanh %84 : vector<8x128xf32>
    %cst_28 = arith.constant 1.000000e+00 : f32
    %86 = vector.broadcast %cst_28 : f32 to vector<8x128xf32>
    %87 = arith.subf %86, %80 : vector<8x128xf32>
    %88 = arith.mulf %87, %85 : vector<8x128xf32>
    %89 = arith.mulf %80, %58 : vector<8x128xf32>
    %90 = arith.addf %88, %89 : vector<8x128xf32>
    %91 = vector.broadcast %60 : i32 to vector<8x128xi32>
    %92 = arith.cmpi slt, %91, %16 : vector<8x128xi32>
    %cst_29 = arith.constant 0.000000e+00 : f32
    %93 = vector.broadcast %cst_29 : f32 to vector<8x128xf32>
    %94 = arith.select %92, %90, %93 : vector<8x128xi1>, vector<8x128xf32>
    %c0_30 = arith.constant 0 : index
    %c1 = arith.constant 1 : index
    %c0_31 = arith.constant 0 : index
    %95 = vector.load %arg8[%c0_30, %c1, %c0_31] : memref<8x8x128xf32, #tpu.memory_space<vmem>>, vector<8x1x128xf32>
    %96 = vector.shape_cast %95 : vector<8x1x128xf32> to vector<8x128xf32>
    %97 = vector.shape_cast %94 : vector<8x128xf32> to vector<8x1x128xf32>
    tpu.vector_store %arg8[%c0_30, %c1, %c0_31], %97 {strides = array<i32>} : memref<8x8x128xf32, #tpu.memory_space<vmem>>, vector<8x1x128xf32>,
    %98 = arith.select %92, %90, %58 : vector<8x128xi1>, vector<8x128xf32>
    %c8_i32_32 = arith.constant 8 : i32
    %99 = arith.muli %arg1, %c8_i32_32 : i32
    %c2_i32 = arith.constant 2 : i32
    %100 = arith.addi %99, %c2_i32 : i32
    %101 = vector.extract_strided_slice %10 {offsets = [16, 0], sizes = [8, 384], strides = [1, 1]} : vector<64x384xf32> to vector<8x384xf32>
    %102 = arith.truncf %98 : vector<8x128xf32> to vector<8x128xbf16>
    %cst_33 = arith.constant dense<0.000000e+00> : vector<8x384xf32>
    %103 = tpu.matmul %102, %17, %cst_33 {dimension_numbers = #tpu.dot_dimension_numbers<[1], [0], [0], [1], [0, 0, 1, 1], [], []>} : vector<8x128xbf16>, vector<128x384xbf16>, vector<8x384xf32> -> vector<8x384xf32>
    %104 = arith.addf %103, %13 : vector<8x384xf32>
    %105 = vector.extract_strided_slice %101 {offsets = [0, 0], sizes = [8, 128], strides = [1, 1]} : vector<8x384xf32> to vector<8x128xf32>
    %106 = vector.extract_strided_slice %104 {offsets = [0, 0], sizes = [8, 128], strides = [1, 1]} : vector<8x384xf32> to vector<8x128xf32>
    %107 = arith.addf %105, %106 : vector<8x128xf32>
    %108 = arith.negf %107 : vector<8x128xf32>
    %109 = math.exp %108 : vector<8x128xf32>
    %cst_34 = arith.constant 1.000000e+00 : f32
    %110 = vector.broadcast %cst_34 : f32 to vector<8x128xf32>
    %111 = arith.addf %110, %109 : vector<8x128xf32>
    %112 = arith.divf %110, %111 : vector<8x128xf32>
    %113 = vector.extract_strided_slice %101 {offsets = [0, 128], sizes = [8, 128], strides = [1, 1]} : vector<8x384xf32> to vector<8x128xf32>
    %114 = vector.extract_strided_slice %104 {offsets = [0, 128], sizes = [8, 128], strides = [1, 1]} : vector<8x384xf32> to vector<8x128xf32>
    %115 = arith.addf %113, %114 : vector<8x128xf32>
    %116 = arith.negf %115 : vector<8x128xf32>
    %117 = math.exp %116 : vector<8x128xf32>
    %cst_35 = arith.constant 1.000000e+00 : f32
    %118 = vector.broadcast %cst_35 : f32 to vector<8x128xf32>
    %119 = arith.addf %118, %117 : vector<8x128xf32>
    %120 = arith.divf %118, %119 : vector<8x128xf32>
    %121 = vector.extract_strided_slice %101 {offsets = [0, 256], sizes = [8, 128], strides = [1, 1]} : vector<8x384xf32> to vector<8x128xf32>
    %122 = vector.extract_strided_slice %104 {offsets = [0, 256], sizes = [8, 128], strides = [1, 1]} : vector<8x384xf32> to vector<8x128xf32>
    %123 = arith.mulf %112, %122 : vector<8x128xf32>
    %124 = arith.addf %121, %123 : vector<8x128xf32>
    %125 = math.tanh %124 : vector<8x128xf32>
    %cst_36 = arith.constant 1.000000e+00 : f32
    %126 = vector.broadcast %cst_36 : f32 to vector<8x128xf32>
    %127 = arith.subf %126, %120 : vector<8x128xf32>
    %128 = arith.mulf %127, %125 : vector<8x128xf32>
    %129 = arith.mulf %120, %98 : vector<8x128xf32>
    %130 = arith.addf %128, %129 : vector<8x128xf32>
    %131 = vector.broadcast %100 : i32 to vector<8x128xi32>
    %132 = arith.cmpi slt, %131, %16 : vector<8x128xi32>
    %cst_37 = arith.constant 0.000000e+00 : f32
    %133 = vector.broadcast %cst_37 : f32 to vector<8x128xf32>
    %134 = arith.select %132, %130, %133 : vector<8x128xi1>, vector<8x128xf32>
    %c0_38 = arith.constant 0 : index
    %c2 = arith.constant 2 : index
    %c0_39 = arith.constant 0 : index
    %135 = vector.load %arg8[%c0_38, %c2, %c0_39] : memref<8x8x128xf32, #tpu.memory_space<vmem>>, vector<8x1x128xf32>
    %136 = vector.shape_cast %135 : vector<8x1x128xf32> to vector<8x128xf32>
    %137 = vector.shape_cast %134 : vector<8x128xf32> to vector<8x1x128xf32>
    tpu.vector_store %arg8[%c0_38, %c2, %c0_39], %137 {strides = array<i32>} : memref<8x8x128xf32, #tpu.memory_space<vmem>>, vector<8x1x128xf32>,
    %138 = arith.select %132, %130, %98 : vector<8x128xi1>, vector<8x128xf32>
    %c8_i32_40 = arith.constant 8 : i32
    %139 = arith.muli %arg1, %c8_i32_40 : i32
    %c3_i32 = arith.constant 3 : i32
    %140 = arith.addi %139, %c3_i32 : i32
    %141 = vector.extract_strided_slice %10 {offsets = [24, 0], sizes = [8, 384], strides = [1, 1]} : vector<64x384xf32> to vector<8x384xf32>
    %142 = arith.truncf %138 : vector<8x128xf32> to vector<8x128xbf16>
    %cst_41 = arith.constant dense<0.000000e+00> : vector<8x384xf32>
    %143 = tpu.matmul %142, %17, %cst_41 {dimension_numbers = #tpu.dot_dimension_numbers<[1], [0], [0], [1], [0, 0, 1, 1], [], []>} : vector<8x128xbf16>, vector<128x384xbf16>, vector<8x384xf32> -> vector<8x384xf32>
    %144 = arith.addf %143, %13 : vector<8x384xf32>
    %145 = vector.extract_strided_slice %141 {offsets = [0, 0], sizes = [8, 128], strides = [1, 1]} : vector<8x384xf32> to vector<8x128xf32>
    %146 = vector.extract_strided_slice %144 {offsets = [0, 0], sizes = [8, 128], strides = [1, 1]} : vector<8x384xf32> to vector<8x128xf32>
    %147 = arith.addf %145, %146 : vector<8x128xf32>
    %148 = arith.negf %147 : vector<8x128xf32>
    %149 = math.exp %148 : vector<8x128xf32>
    %cst_42 = arith.constant 1.000000e+00 : f32
    %150 = vector.broadcast %cst_42 : f32 to vector<8x128xf32>
    %151 = arith.addf %150, %149 : vector<8x128xf32>
    %152 = arith.divf %150, %151 : vector<8x128xf32>
    %153 = vector.extract_strided_slice %141 {offsets = [0, 128], sizes = [8, 128], strides = [1, 1]} : vector<8x384xf32> to vector<8x128xf32>
    %154 = vector.extract_strided_slice %144 {offsets = [0, 128], sizes = [8, 128], strides = [1, 1]} : vector<8x384xf32> to vector<8x128xf32>
    %155 = arith.addf %153, %154 : vector<8x128xf32>
    %156 = arith.negf %155 : vector<8x128xf32>
    %157 = math.exp %156 : vector<8x128xf32>
    %cst_43 = arith.constant 1.000000e+00 : f32
    %158 = vector.broadcast %cst_43 : f32 to vector<8x128xf32>
    %159 = arith.addf %158, %157 : vector<8x128xf32>
    %160 = arith.divf %158, %159 : vector<8x128xf32>
    %161 = vector.extract_strided_slice %141 {offsets = [0, 256], sizes = [8, 128], strides = [1, 1]} : vector<8x384xf32> to vector<8x128xf32>
    %162 = vector.extract_strided_slice %144 {offsets = [0, 256], sizes = [8, 128], strides = [1, 1]} : vector<8x384xf32> to vector<8x128xf32>
    %163 = arith.mulf %152, %162 : vector<8x128xf32>
    %164 = arith.addf %161, %163 : vector<8x128xf32>
    %165 = math.tanh %164 : vector<8x128xf32>
    %cst_44 = arith.constant 1.000000e+00 : f32
    %166 = vector.broadcast %cst_44 : f32 to vector<8x128xf32>
    %167 = arith.subf %166, %160 : vector<8x128xf32>
    %168 = arith.mulf %167, %165 : vector<8x128xf32>
    %169 = arith.mulf %160, %138 : vector<8x128xf32>
    %170 = arith.addf %168, %169 : vector<8x128xf32>
    %171 = vector.broadcast %140 : i32 to vector<8x128xi32>
    %172 = arith.cmpi slt, %171, %16 : vector<8x128xi32>
    %cst_45 = arith.constant 0.000000e+00 : f32
    %173 = vector.broadcast %cst_45 : f32 to vector<8x128xf32>
    %174 = arith.select %172, %170, %173 : vector<8x128xi1>, vector<8x128xf32>
    %c0_46 = arith.constant 0 : index
    %c3 = arith.constant 3 : index
    %c0_47 = arith.constant 0 : index
    %175 = vector.load %arg8[%c0_46, %c3, %c0_47] : memref<8x8x128xf32, #tpu.memory_space<vmem>>, vector<8x1x128xf32>
    %176 = vector.shape_cast %175 : vector<8x1x128xf32> to vector<8x128xf32>
    %177 = vector.shape_cast %174 : vector<8x128xf32> to vector<8x1x128xf32>
    tpu.vector_store %arg8[%c0_46, %c3, %c0_47], %177 {strides = array<i32>} : memref<8x8x128xf32, #tpu.memory_space<vmem>>, vector<8x1x128xf32>,
    %178 = arith.select %172, %170, %138 : vector<8x128xi1>, vector<8x128xf32>
    %c8_i32_48 = arith.constant 8 : i32
    %179 = arith.muli %arg1, %c8_i32_48 : i32
    %c4_i32 = arith.constant 4 : i32
    %180 = arith.addi %179, %c4_i32 : i32
    %181 = vector.extract_strided_slice %10 {offsets = [32, 0], sizes = [8, 384], strides = [1, 1]} : vector<64x384xf32> to vector<8x384xf32>
    %182 = arith.truncf %178 : vector<8x128xf32> to vector<8x128xbf16>
    %cst_49 = arith.constant dense<0.000000e+00> : vector<8x384xf32>
    %183 = tpu.matmul %182, %17, %cst_49 {dimension_numbers = #tpu.dot_dimension_numbers<[1], [0], [0], [1], [0, 0, 1, 1], [], []>} : vector<8x128xbf16>, vector<128x384xbf16>, vector<8x384xf32> -> vector<8x384xf32>
    %184 = arith.addf %183, %13 : vector<8x384xf32>
    %185 = vector.extract_strided_slice %181 {offsets = [0, 0], sizes = [8, 128], strides = [1, 1]} : vector<8x384xf32> to vector<8x128xf32>
    %186 = vector.extract_strided_slice %184 {offsets = [0, 0], sizes = [8, 128], strides = [1, 1]} : vector<8x384xf32> to vector<8x128xf32>
    %187 = arith.addf %185, %186 : vector<8x128xf32>
    %188 = arith.negf %187 : vector<8x128xf32>
    %189 = math.exp %188 : vector<8x128xf32>
    %cst_50 = arith.constant 1.000000e+00 : f32
    %190 = vector.broadcast %cst_50 : f32 to vector<8x128xf32>
    %191 = arith.addf %190, %189 : vector<8x128xf32>
    %192 = arith.divf %190, %191 : vector<8x128xf32>
    %193 = vector.extract_strided_slice %181 {offsets = [0, 128], sizes = [8, 128], strides = [1, 1]} : vector<8x384xf32> to vector<8x128xf32>
    %194 = vector.extract_strided_slice %184 {offsets = [0, 128], sizes = [8, 128], strides = [1, 1]} : vector<8x384xf32> to vector<8x128xf32>
    %195 = arith.addf %193, %194 : vector<8x128xf32>
    %196 = arith.negf %195 : vector<8x128xf32>
    %197 = math.exp %196 : vector<8x128xf32>
    %cst_51 = arith.constant 1.000000e+00 : f32
    %198 = vector.broadcast %cst_51 : f32 to vector<8x128xf32>
    %199 = arith.addf %198, %197 : vector<8x128xf32>
    %200 = arith.divf %198, %199 : vector<8x128xf32>
    %201 = vector.extract_strided_slice %181 {offsets = [0, 256], sizes = [8, 128], strides = [1, 1]} : vector<8x384xf32> to vector<8x128xf32>
    %202 = vector.extract_strided_slice %184 {offsets = [0, 256], sizes = [8, 128], strides = [1, 1]} : vector<8x384xf32> to vector<8x128xf32>
    %203 = arith.mulf %192, %202 : vector<8x128xf32>
    %204 = arith.addf %201, %203 : vector<8x128xf32>
    %205 = math.tanh %204 : vector<8x128xf32>
    %cst_52 = arith.constant 1.000000e+00 : f32
    %206 = vector.broadcast %cst_52 : f32 to vector<8x128xf32>
    %207 = arith.subf %206, %200 : vector<8x128xf32>
    %208 = arith.mulf %207, %205 : vector<8x128xf32>
    %209 = arith.mulf %200, %178 : vector<8x128xf32>
    %210 = arith.addf %208, %209 : vector<8x128xf32>
    %211 = vector.broadcast %180 : i32 to vector<8x128xi32>
    %212 = arith.cmpi slt, %211, %16 : vector<8x128xi32>
    %cst_53 = arith.constant 0.000000e+00 : f32
    %213 = vector.broadcast %cst_53 : f32 to vector<8x128xf32>
    %214 = arith.select %212, %210, %213 : vector<8x128xi1>, vector<8x128xf32>
    %c0_54 = arith.constant 0 : index
    %c4 = arith.constant 4 : index
    %c0_55 = arith.constant 0 : index
    %215 = vector.load %arg8[%c0_54, %c4, %c0_55] : memref<8x8x128xf32, #tpu.memory_space<vmem>>, vector<8x1x128xf32>
    %216 = vector.shape_cast %215 : vector<8x1x128xf32> to vector<8x128xf32>
    %217 = vector.shape_cast %214 : vector<8x128xf32> to vector<8x1x128xf32>
    tpu.vector_store %arg8[%c0_54, %c4, %c0_55], %217 {strides = array<i32>} : memref<8x8x128xf32, #tpu.memory_space<vmem>>, vector<8x1x128xf32>,
    %218 = arith.select %212, %210, %178 : vector<8x128xi1>, vector<8x128xf32>
    %c8_i32_56 = arith.constant 8 : i32
    %219 = arith.muli %arg1, %c8_i32_56 : i32
    %c5_i32 = arith.constant 5 : i32
    %220 = arith.addi %219, %c5_i32 : i32
    %221 = vector.extract_strided_slice %10 {offsets = [40, 0], sizes = [8, 384], strides = [1, 1]} : vector<64x384xf32> to vector<8x384xf32>
    %222 = arith.truncf %218 : vector<8x128xf32> to vector<8x128xbf16>
    %cst_57 = arith.constant dense<0.000000e+00> : vector<8x384xf32>
    %223 = tpu.matmul %222, %17, %cst_57 {dimension_numbers = #tpu.dot_dimension_numbers<[1], [0], [0], [1], [0, 0, 1, 1], [], []>} : vector<8x128xbf16>, vector<128x384xbf16>, vector<8x384xf32> -> vector<8x384xf32>
    %224 = arith.addf %223, %13 : vector<8x384xf32>
    %225 = vector.extract_strided_slice %221 {offsets = [0, 0], sizes = [8, 128], strides = [1, 1]} : vector<8x384xf32> to vector<8x128xf32>
    %226 = vector.extract_strided_slice %224 {offsets = [0, 0], sizes = [8, 128], strides = [1, 1]} : vector<8x384xf32> to vector<8x128xf32>
    %227 = arith.addf %225, %226 : vector<8x128xf32>
    %228 = arith.negf %227 : vector<8x128xf32>
    %229 = math.exp %228 : vector<8x128xf32>
    %cst_58 = arith.constant 1.000000e+00 : f32
    %230 = vector.broadcast %cst_58 : f32 to vector<8x128xf32>
    %231 = arith.addf %230, %229 : vector<8x128xf32>
    %232 = arith.divf %230, %231 : vector<8x128xf32>
    %233 = vector.extract_strided_slice %221 {offsets = [0, 128], sizes = [8, 128], strides = [1, 1]} : vector<8x384xf32> to vector<8x128xf32>
    %234 = vector.extract_strided_slice %224 {offsets = [0, 128], sizes = [8, 128], strides = [1, 1]} : vector<8x384xf32> to vector<8x128xf32>
    %235 = arith.addf %233, %234 : vector<8x128xf32>
    %236 = arith.negf %235 : vector<8x128xf32>
    %237 = math.exp %236 : vector<8x128xf32>
    %cst_59 = arith.constant 1.000000e+00 : f32
    %238 = vector.broadcast %cst_59 : f32 to vector<8x128xf32>
    %239 = arith.addf %238, %237 : vector<8x128xf32>
    %240 = arith.divf %238, %239 : vector<8x128xf32>
    %241 = vector.extract_strided_slice %221 {offsets = [0, 256], sizes = [8, 128], strides = [1, 1]} : vector<8x384xf32> to vector<8x128xf32>
    %242 = vector.extract_strided_slice %224 {offsets = [0, 256], sizes = [8, 128], strides = [1, 1]} : vector<8x384xf32> to vector<8x128xf32>
    %243 = arith.mulf %232, %242 : vector<8x128xf32>
    %244 = arith.addf %241, %243 : vector<8x128xf32>
    %245 = math.tanh %244 : vector<8x128xf32>
    %cst_60 = arith.constant 1.000000e+00 : f32
    %246 = vector.broadcast %cst_60 : f32 to vector<8x128xf32>
    %247 = arith.subf %246, %240 : vector<8x128xf32>
    %248 = arith.mulf %247, %245 : vector<8x128xf32>
    %249 = arith.mulf %240, %218 : vector<8x128xf32>
    %250 = arith.addf %248, %249 : vector<8x128xf32>
    %251 = vector.broadcast %220 : i32 to vector<8x128xi32>
    %252 = arith.cmpi slt, %251, %16 : vector<8x128xi32>
    %cst_61 = arith.constant 0.000000e+00 : f32
    %253 = vector.broadcast %cst_61 : f32 to vector<8x128xf32>
    %254 = arith.select %252, %250, %253 : vector<8x128xi1>, vector<8x128xf32>
    %c0_62 = arith.constant 0 : index
    %c5 = arith.constant 5 : index
    %c0_63 = arith.constant 0 : index
    %255 = vector.load %arg8[%c0_62, %c5, %c0_63] : memref<8x8x128xf32, #tpu.memory_space<vmem>>, vector<8x1x128xf32>
    %256 = vector.shape_cast %255 : vector<8x1x128xf32> to vector<8x128xf32>
    %257 = vector.shape_cast %254 : vector<8x128xf32> to vector<8x1x128xf32>
    tpu.vector_store %arg8[%c0_62, %c5, %c0_63], %257 {strides = array<i32>} : memref<8x8x128xf32, #tpu.memory_space<vmem>>, vector<8x1x128xf32>,
    %258 = arith.select %252, %250, %218 : vector<8x128xi1>, vector<8x128xf32>
    %c8_i32_64 = arith.constant 8 : i32
    %259 = arith.muli %arg1, %c8_i32_64 : i32
    %c6_i32 = arith.constant 6 : i32
    %260 = arith.addi %259, %c6_i32 : i32
    %261 = vector.extract_strided_slice %10 {offsets = [48, 0], sizes = [8, 384], strides = [1, 1]} : vector<64x384xf32> to vector<8x384xf32>
    %262 = arith.truncf %258 : vector<8x128xf32> to vector<8x128xbf16>
    %cst_65 = arith.constant dense<0.000000e+00> : vector<8x384xf32>
    %263 = tpu.matmul %262, %17, %cst_65 {dimension_numbers = #tpu.dot_dimension_numbers<[1], [0], [0], [1], [0, 0, 1, 1], [], []>} : vector<8x128xbf16>, vector<128x384xbf16>, vector<8x384xf32> -> vector<8x384xf32>
    %264 = arith.addf %263, %13 : vector<8x384xf32>
    %265 = vector.extract_strided_slice %261 {offsets = [0, 0], sizes = [8, 128], strides = [1, 1]} : vector<8x384xf32> to vector<8x128xf32>
    %266 = vector.extract_strided_slice %264 {offsets = [0, 0], sizes = [8, 128], strides = [1, 1]} : vector<8x384xf32> to vector<8x128xf32>
    %267 = arith.addf %265, %266 : vector<8x128xf32>
    %268 = arith.negf %267 : vector<8x128xf32>
    %269 = math.exp %268 : vector<8x128xf32>
    %cst_66 = arith.constant 1.000000e+00 : f32
    %270 = vector.broadcast %cst_66 : f32 to vector<8x128xf32>
    %271 = arith.addf %270, %269 : vector<8x128xf32>
    %272 = arith.divf %270, %271 : vector<8x128xf32>
    %273 = vector.extract_strided_slice %261 {offsets = [0, 128], sizes = [8, 128], strides = [1, 1]} : vector<8x384xf32> to vector<8x128xf32>
    %274 = vector.extract_strided_slice %264 {offsets = [0, 128], sizes = [8, 128], strides = [1, 1]} : vector<8x384xf32> to vector<8x128xf32>
    %275 = arith.addf %273, %274 : vector<8x128xf32>
    %276 = arith.negf %275 : vector<8x128xf32>
    %277 = math.exp %276 : vector<8x128xf32>
    %cst_67 = arith.constant 1.000000e+00 : f32
    %278 = vector.broadcast %cst_67 : f32 to vector<8x128xf32>
    %279 = arith.addf %278, %277 : vector<8x128xf32>
    %280 = arith.divf %278, %279 : vector<8x128xf32>
    %281 = vector.extract_strided_slice %261 {offsets = [0, 256], sizes = [8, 128], strides = [1, 1]} : vector<8x384xf32> to vector<8x128xf32>
    %282 = vector.extract_strided_slice %264 {offsets = [0, 256], sizes = [8, 128], strides = [1, 1]} : vector<8x384xf32> to vector<8x128xf32>
    %283 = arith.mulf %272, %282 : vector<8x128xf32>
    %284 = arith.addf %281, %283 : vector<8x128xf32>
    %285 = math.tanh %284 : vector<8x128xf32>
    %cst_68 = arith.constant 1.000000e+00 : f32
    %286 = vector.broadcast %cst_68 : f32 to vector<8x128xf32>
    %287 = arith.subf %286, %280 : vector<8x128xf32>
    %288 = arith.mulf %287, %285 : vector<8x128xf32>
    %289 = arith.mulf %280, %258 : vector<8x128xf32>
    %290 = arith.addf %288, %289 : vector<8x128xf32>
    %291 = vector.broadcast %260 : i32 to vector<8x128xi32>
    %292 = arith.cmpi slt, %291, %16 : vector<8x128xi32>
    %cst_69 = arith.constant 0.000000e+00 : f32
    %293 = vector.broadcast %cst_69 : f32 to vector<8x128xf32>
    %294 = arith.select %292, %290, %293 : vector<8x128xi1>, vector<8x128xf32>
    %c0_70 = arith.constant 0 : index
    %c6 = arith.constant 6 : index
    %c0_71 = arith.constant 0 : index
    %295 = vector.load %arg8[%c0_70, %c6, %c0_71] : memref<8x8x128xf32, #tpu.memory_space<vmem>>, vector<8x1x128xf32>
    %296 = vector.shape_cast %295 : vector<8x1x128xf32> to vector<8x128xf32>
    %297 = vector.shape_cast %294 : vector<8x128xf32> to vector<8x1x128xf32>
    tpu.vector_store %arg8[%c0_70, %c6, %c0_71], %297 {strides = array<i32>} : memref<8x8x128xf32, #tpu.memory_space<vmem>>, vector<8x1x128xf32>,
    %298 = arith.select %292, %290, %258 : vector<8x128xi1>, vector<8x128xf32>
    %c8_i32_72 = arith.constant 8 : i32
    %299 = arith.muli %arg1, %c8_i32_72 : i32
    %c7_i32 = arith.constant 7 : i32
    %300 = arith.addi %299, %c7_i32 : i32
    %301 = vector.extract_strided_slice %10 {offsets = [56, 0], sizes = [8, 384], strides = [1, 1]} : vector<64x384xf32> to vector<8x384xf32>
    %302 = arith.truncf %298 : vector<8x128xf32> to vector<8x128xbf16>
    %cst_73 = arith.constant dense<0.000000e+00> : vector<8x384xf32>
    %303 = tpu.matmul %302, %17, %cst_73 {dimension_numbers = #tpu.dot_dimension_numbers<[1], [0], [0], [1], [0, 0, 1, 1], [], []>} : vector<8x128xbf16>, vector<128x384xbf16>, vector<8x384xf32> -> vector<8x384xf32>
    %304 = arith.addf %303, %13 : vector<8x384xf32>
    %305 = vector.extract_strided_slice %301 {offsets = [0, 0], sizes = [8, 128], strides = [1, 1]} : vector<8x384xf32> to vector<8x128xf32>
    %306 = vector.extract_strided_slice %304 {offsets = [0, 0], sizes = [8, 128], strides = [1, 1]} : vector<8x384xf32> to vector<8x128xf32>
    %307 = arith.addf %305, %306 : vector<8x128xf32>
    %308 = arith.negf %307 : vector<8x128xf32>
    %309 = math.exp %308 : vector<8x128xf32>
    %cst_74 = arith.constant 1.000000e+00 : f32
    %310 = vector.broadcast %cst_74 : f32 to vector<8x128xf32>
    %311 = arith.addf %310, %309 : vector<8x128xf32>
    %312 = arith.divf %310, %311 : vector<8x128xf32>
    %313 = vector.extract_strided_slice %301 {offsets = [0, 128], sizes = [8, 128], strides = [1, 1]} : vector<8x384xf32> to vector<8x128xf32>
    %314 = vector.extract_strided_slice %304 {offsets = [0, 128], sizes = [8, 128], strides = [1, 1]} : vector<8x384xf32> to vector<8x128xf32>
    %315 = arith.addf %313, %314 : vector<8x128xf32>
    %316 = arith.negf %315 : vector<8x128xf32>
    %317 = math.exp %316 : vector<8x128xf32>
    %cst_75 = arith.constant 1.000000e+00 : f32
    %318 = vector.broadcast %cst_75 : f32 to vector<8x128xf32>
    %319 = arith.addf %318, %317 : vector<8x128xf32>
    %320 = arith.divf %318, %319 : vector<8x128xf32>
    %321 = vector.extract_strided_slice %301 {offsets = [0, 256], sizes = [8, 128], strides = [1, 1]} : vector<8x384xf32> to vector<8x128xf32>
    %322 = vector.extract_strided_slice %304 {offsets = [0, 256], sizes = [8, 128], strides = [1, 1]} : vector<8x384xf32> to vector<8x128xf32>
    %323 = arith.mulf %312, %322 : vector<8x128xf32>
    %324 = arith.addf %321, %323 : vector<8x128xf32>
    %325 = math.tanh %324 : vector<8x128xf32>
    %cst_76 = arith.constant 1.000000e+00 : f32
    %326 = vector.broadcast %cst_76 : f32 to vector<8x128xf32>
    %327 = arith.subf %326, %320 : vector<8x128xf32>
    %328 = arith.mulf %327, %325 : vector<8x128xf32>
    %329 = arith.mulf %320, %298 : vector<8x128xf32>
    %330 = arith.addf %328, %329 : vector<8x128xf32>
    %331 = vector.broadcast %300 : i32 to vector<8x128xi32>
    %332 = arith.cmpi slt, %331, %16 : vector<8x128xi32>
    %cst_77 = arith.constant 0.000000e+00 : f32
    %333 = vector.broadcast %cst_77 : f32 to vector<8x128xf32>
    %334 = arith.select %332, %330, %333 : vector<8x128xi1>, vector<8x128xf32>
    %c0_78 = arith.constant 0 : index
    %c7 = arith.constant 7 : index
    %c0_79 = arith.constant 0 : index
    %335 = vector.load %arg8[%c0_78, %c7, %c0_79] : memref<8x8x128xf32, #tpu.memory_space<vmem>>, vector<8x1x128xf32>
    %336 = vector.shape_cast %335 : vector<8x1x128xf32> to vector<8x128xf32>
    %337 = vector.shape_cast %334 : vector<8x128xf32> to vector<8x1x128xf32>
    tpu.vector_store %arg8[%c0_78, %c7, %c0_79], %337 {strides = array<i32>} : memref<8x8x128xf32, #tpu.memory_space<vmem>>, vector<8x1x128xf32>,
    %338 = arith.select %332, %330, %298 : vector<8x128xi1>, vector<8x128xf32>
    %c0_80 = arith.constant 0 : index
    %c0_81 = arith.constant 0 : index
    %339 = vector.load %arg10[%c0_80, %c0_81] : memref<8x128xf32, #tpu.memory_space<vmem>>, vector<8x128xf32>
    tpu.vector_store %arg10[%c0_80, %c0_81], %338 {strides = array<i32>} : memref<8x128xf32, #tpu.memory_space<vmem>>, vector<8x128xf32>,
    %c1_i32_82 = arith.constant 1 : i32
    %340 = arith.cmpi eq, %arg1, %c1_i32_82 : i32
    %341 = arith.extui %340 : i1 to i32
    %c0_i32_83 = arith.constant 0 : i32
    %342 = arith.cmpi ne, %341, %c0_i32_83 : i32
    scf.if %342 {
      %c0_84 = arith.constant 0 : index
      %c0_85 = arith.constant 0 : index
      %c0_86 = arith.constant 0 : index
      %343 = vector.load %arg9[%c0_84, %c0_85, %c0_86] : memref<1x8x128xf32, #tpu.memory_space<vmem>>, vector<1x8x128xf32>
      %344 = vector.shape_cast %343 : vector<1x8x128xf32> to vector<8x128xf32>
      %345 = vector.shape_cast %338 : vector<8x128xf32> to vector<1x8x128xf32>
      tpu.vector_store %arg9[%c0_84, %c0_85, %c0_86], %345 {strides = array<i32>} : memref<1x8x128xf32, #tpu.memory_space<vmem>>, vector<1x8x128xf32>,
    } else {
    }
    return
  }
  func.func @transform_0(%arg0: i32, %arg1: i32) -> (i32, i32) {
    %c0_i32 = arith.constant 0 : i32
    %c0_i32_0 = arith.constant 0 : i32
    return %arg0, %c0_i32 : i32, i32
  }
  func.func @transform_1(%arg0: i32, %arg1: i32) -> (i32, i32, i32) {
    %c0_i32 = arith.constant 0 : i32
    %c0_i32_0 = arith.constant 0 : i32
    return %arg1, %arg0, %c0_i32 : i32, i32, i32
  }
  func.func @transform_2(%arg0: i32, %arg1: i32) -> (i32, i32) {
    %c0_i32 = arith.constant 0 : i32
    %c0_i32_0 = arith.constant 0 : i32
    %c0_i32_1 = arith.constant 0 : i32
    return %c0_i32, %c0_i32_0 : i32, i32
  }
  func.func @transform_3(%arg0: i32, %arg1: i32) -> (i32, i32) {
    %c0_i32 = arith.constant 0 : i32
    %c0_i32_0 = arith.constant 0 : i32
    %c0_i32_1 = arith.constant 0 : i32
    return %c0_i32, %c0_i32_0 : i32, i32
  }
  func.func @transform_4(%arg0: i32, %arg1: i32) -> (i32, i32) {
    %c0_i32 = arith.constant 0 : i32
    %c0_i32_0 = arith.constant 0 : i32
    %c0_i32_1 = arith.constant 0 : i32
    return %c0_i32, %c0_i32_0 : i32, i32
  }
  func.func @transform_5(%arg0: i32, %arg1: i32) -> (i32, i32) {
    %c0_i32 = arith.constant 0 : i32
    %c0_i32_0 = arith.constant 0 : i32
    %c0_i32_1 = arith.constant 0 : i32
    return %c0_i32, %c0_i32_0 : i32, i32
  }
  func.func @transform_6(%arg0: i32, %arg1: i32) -> (i32, i32, i32) {
    %c0_i32 = arith.constant 0 : i32
    %c0_i32_0 = arith.constant 0 : i32
    return %arg0, %arg1, %c0_i32 : i32, i32, i32
  }
  func.func @transform_7(%arg0: i32, %arg1: i32) -> (i32, i32, i32) {
    %c0_i32 = arith.constant 0 : i32
    %c0_i32_0 = arith.constant 0 : i32
    %c0_i32_1 = arith.constant 0 : i32
    return %c0_i32, %arg0, %c0_i32_0 : i32, i32, i32
  }
}

</mosaic_0001>

<bundles_post_ra>
// kernel: encoder_forward.1
= control target key start
LH: loop header
LB: loop body
LE: loop exit
PB: predicated region body
PF: predicated region fallthrough
CT: control target
= control target key end

     0   :  { %s2943_s24 = smov 0   ;;  %s2945_s25 = smov 0   ;;  %s3890_s0 = inlined_call_operand.vmem [shape: s32[8,1], index: 0, kind: input, shape index: {}]   ;;  %s3891_s1 = inlined_call_operand.vmem [shape: f32[16,8,32], index: 1, kind: input, shape index: {}]   ;;  %s3892_s2 = inlined_call_operand.vmem [shape: bf16[32,384], index: 2, kind: input, shape index: {}]   ;;  %s3893_s3 = inlined_call_operand.vmem [shape: f32[1,384], index: 3, kind: input, shape index: {}]   ;;  %s3894_s4 = inlined_call_operand.vmem [shape: bf16[128,384], index: 4, kind: input, shape index: {}]   ;;  %s3895_s5 = inlined_call_operand.vmem [shape: f32[1,384], index: 5, kind: input, shape index: {}]   ;;  %s3896_s6 = inlined_call_operand.vmem [shape: f32[8,16,128], index: 6, kind: output, shape index: {0}]   ;;  %s3897_s7 = inlined_call_operand.vmem [shape: f32[1,8,128], index: 7, kind: output, shape index: {1}]  }
   0x1   :  { %s2947_s26 = smov 0   ;;  %s2949_s27 = smov 0  }
   0x2   :  { %s2951_s28 = smov 0  }
   0x3 LB: > { %s2315_s29 = sadd.s32 4294967295, %s2896_s28   ;;  %s27_s30 = sadd.s32 1, %s2892_s27  ;;  %s2896_s28 = sphi %s2951_s28, %s18_s28   ;;  %s2892_s27 = sphi %s2949_s27, %s3926_s27   ;;  %s2888_s26 = sphi %s2947_s26, %s3925_s26   ;;  %s2884_s25 = sphi %s2945_s25, %s3924_s25   ;;  %s2880_s24 = sphi %s2943_s24, %s3923_s24  }
   0x4   : > { %p28_p0 = scmp.ge.s32.totalorder %s27_s30, 2  ;;  %s177_s8 = sadd.s32 1, %s2884_s25 }
   0x5   : > { %p187_p1 = scmp.ne.s32.totalorder %s2884_s25, %s2880_s24  ;;  %p188_p2 = scmp.eq.s32.totalorder %s2315_s29, 1 }
   0x6   : > { %s3928_s30 = smov (%p28_p0, %s27_s30), 0  ;;  %p2320_p4 = scmp.ge.s32.totalorder %s2896_s28, 1 }
   0x7   : > { %p2972_p3 = por %p188_p2, %p187_p1  ;;  %s173_s10 = ssub.s32 %s2892_s27, %s3928_s30 }
   0x8   : > { %p269_p5 = scmp.lt.s32.totalorder %s2896_s28, 3  ;;  %p175_p6 = scmp.eq.s32.totalorder %s173_s10, 0 }
   0xa   : > { %p270_p7 = pnand %p2320_p4, %p269_p5 }
   0xb   : > { %s2981_s11 = scalar_select %p175_p6, %s2884_s25, %s177_s8  }
   0xc   : > { %273 = sbr.rel (%p270_p7) target bundleno = 2120 (0x848), region = 44 }
  0x11   : > { %s302_s12 = sand.u32 1, %s2880_s24   ;;  %s2984_s13 = sshll.u32 %s2888_s26, 3 }
  0x12   : > { %s2321_s14 = sshll.u32 %s302_s12, 6  ;;  %p316_p8 = scmp.lt.s32.totalorder %s2984_s13, 15 }
  0x13   : > { %s2993_s20 = scalar_lea.vmem [#allocation3], %s2321_s14  ;;  %p2324_p9 = scmp.ne.s32.totalorder %s2888_s26, 0 }
  0x14   : > { %s317_s15 = scalar_select %p316_p8, %s2984_s13, 15 }
  0x15   : > { %333 = sbr.rel (%p2324_p9) target bundleno = 28 (0x1c), region = 48 }
  0x16   : > { %s2323_s16 = sshll.u32 %s317_s15, 3 }
  0x17   : > { %s2991_s19 = scalar_lea.vmem %s3891_s1, %s2323_s16 }
  0x1a   : > { %v2898_v0 = vmov 0.0  }
  0x1b   : > { %334 = vst [vmem:[#allocation2] sm:$0xff] %v2898_v0 }
  0x1c PF: > { %v2714_v1 = vld [vmem:[%s3892_s2 + $0x1c] ss:$12 sps:$4 sm:$0xff]   ;;  %v2716_v2 = vld [vmem:[%s3892_s2 + $0x18] ss:$12 sps:$4 sm:$0xff]   ;;  %v3898_v3 = vmov 0   ;;  %vm404_vm0 = vcmask 261120   ;;  %v357_v48 = vlaneseq }
  0x1d   : > { %449 = vmatprep.mubr.bf16.mxu0 %v3898_v3  ;;  %2713 = vset.pattern.permute.xlu0 %v3898_v3  ;;  %v2717_v4 = vld [vmem:[%s3892_s2 + $0x4] ss:$12 sps:$4 sm:$0xff]   ;;  %v2719_v5 = vld [vmem:[%s3892_s2] ss:$12 sps:$4 sm:$0xff]   ;;  %v3021_v10 = vld [vmem:[%s3894_s4 + $0xa8] ss:$12 sps:$4 sm:$0xff]  }
  0x1e   : > { %429 = vmatprep.subr.bf16.mxu0 %v2714_v1  ;;  %v335_v6 = vld [vmem:[%s2991_s19] sm:$0xff]  ;;  %v336_v7 = vld [vmem:[%s2991_s19 + $0x8] sm:$0xff]  ;;  %v3032_v12 = vld [vmem:[%s3894_s4 + $0x90] ss:$12 sps:$4 sm:$0xff]   ;;  %v3900_v26 = vmov 0.0   ;;  %vm2901_vm1 = vmmov 0  }
  0x1f   : > { %430 = vmatpush1.bf16.msra.mxu0 %v2716_v2  ;;  %v343_v8 = vpack.c.bf16 %v336_v7, %v335_v6  ;;  %v3015_v9 = vld [vmem:[%s3894_s4 + $0xac] ss:$12 sps:$4 sm:$0xff]   ;;  %v3027_v11 = vld [vmem:[%s3894_s4 + $0x94] ss:$12 sps:$4 sm:$0xff]   ;;  %v3043_v15 = vld [vmem:[%s3894_s4 + $0x7c] ss:$12 sps:$4 sm:$0xff]  }
  0x20   : > { %431 = vmatprep.subr.bf16.mxu0 %v2717_v4  ;;  %v337_v13 = vld [vmem:[%s2991_s19 + $0x10] sm:$0xff]  ;;  %v338_v14 = vld [vmem:[%s2991_s19 + $0x18] sm:$0xff]  ;;  %v2737_v16 = vld [vmem:[%s3892_s2 + $0x20] ss:$12 sps:$4 sm:$0xff]   ;;  %v3234_v49 = vshrl.u32 %v357_v48, 7  ;;  %s911_s18 = sadd.s32 1, %s2984_s13 }
  0x21   : > { %2500 = vmatprep.mubr.msk.bf16.mxu1 %vm404_vm0, %v343_v8  ;;  %v344_v17 = vpack.c.bf16 %v338_v14, %v337_v13  ;;  %v3052_v18 = vld [vmem:[%s3894_s4 + $0x78] ss:$12 sps:$4 sm:$0xff]   ;;  %2496 = vmatprep.subr.bf16.mxu1 %v2737_v16  ;;  %v2741_v20 = vld [vmem:[%s3892_s2 + $0x8] ss:$12 sps:$4 sm:$0xff]   ;;  %v3066_v21 = vld [vmem:[%s3894_s4 + $0x60] ss:$12 sps:$4 sm:$0xff]  }
  0x22   : > { %v3058_v19 = vld [vmem:[%s3894_s4 + $0x64] ss:$12 sps:$4 sm:$0xff]   ;;  %2497 = vmatpush3.bf16.msra.mxu1 %v2737_v16  ;;  %v340_v23 = vld [vmem:[%s2991_s19 + $0x28] sm:$0xff]  ;;  %v3094_v29 = vld [vmem:[%s3894_s4 + $0x34] ss:$12 sps:$4 sm:$0xff]   ;;  %v359_v50 = vsub.s32 0, %v3234_v49 }
  0x23   : > { %432 = vmatpush1.bf16.msra.mxu0 %v2719_v5  ;;  %v339_v22 = vld [vmem:[%s2991_s19 + $0x20] sm:$0xff]  ;;  %2498 = vmatprep.subr.bf16.mxu1 %v2741_v20  ;;  %v3076_v24 = vld [vmem:[%s3894_s4 + $0x4c] ss:$12 sps:$4 sm:$0xff]   ;;  %v3082_v25 = vld [vmem:[%s3894_s4 + $0xb0] ss:$12 sps:$4 sm:$0xff]   ;;  %v363_v53 = vsub.s32 1, %v3234_v49 }
  0x24   : > { %739 = vmatprep.subr.bf16.mxu0 %v3015_v9  ;;  %v345_v27 = vpack.c.bf16 %v340_v23, %v339_v22  ;;  %v3088_v28 = vld [vmem:[%s3894_s4 + $0x48] ss:$12 sps:$4 sm:$0xff]   ;;  %v3102_v30 = vld [vmem:[%s3894_s4 + $0x98] ss:$12 sps:$4 sm:$0xff]   ;;  %v3116_v34 = vld [vmem:[%s3894_s4 + $0x30] ss:$12 sps:$4 sm:$0xff]  }
  0x25   : > { %v341_v31 = vld [vmem:[%s2991_s19 + $0x30] sm:$0xff]  ;;  %v342_v32 = vld [vmem:[%s2991_s19 + $0x38] sm:$0xff]  ;;  %v572_v33 = vld [vmem:[%s3890_s0] sm:$0xff]  ;;  %v3902_v60 = vsub.s32 2, %v3234_v49  ;;  %s1085_s21 = sadd.s32 2, %s2984_s13  ;;  %s1259_s24 = sadd.s32 3, %s2984_s13 }
  0x26   : > { %2331 = vmatmul.mubr.msk.bf16.vlgmr.msra.gmra.mxu0 %vm404_vm0, %v343_v8  ;;  %2499 = vmatpush3.bf16.msra.mxu1 %v2741_v20  ;;  %v3123_v35 = vld [vmem:[%s3894_s4 + $0x1c] ss:$12 sps:$4 sm:$0xff]   ;;  %v3129_v36 = vld [vmem:[%s3894_s4 + $0x80] ss:$12 sps:$4 sm:$0xff]   ;;  %v346_v37 = vpack.c.bf16 %v342_v32, %v341_v31  ;;  %v3136_v38 = vld [vmem:[%s3894_s4 + $0x18] ss:$12 sps:$4 sm:$0xff]  }
  0x27   : > { %740 = vmatpush1.bf16.msra.mxu0 %v3021_v10  ;;  %459 = vmatprep.mubr.bf16.mxu0 %v3898_v3  ;;  %v3143_v39 = vld [vmem:[%s3894_s4 + $0x4] ss:$12 sps:$4 sm:$0xff]   ;;  %v3149_v40 = vld [vmem:[%s3894_s4 + $0x68] ss:$12 sps:$4 sm:$0xff]   ;;  %v3159_v41 = vld [vmem:[%s3894_s4] ss:$12 sps:$4 sm:$0xff]  }
  0x28   : > { %741 = vmatprep.subr.bf16.mxu0 %v3027_v11  ;;  %2508 = vmatprep.subr.bf16.mxu1 %v3900_v26  ;;  %v3162_v42 = vld [vmem:[#allocation2] sm:$0xff]  ;;  %v3169_v43 = vld [vmem:[%s3894_s4 + $0x50] ss:$12 sps:$4 sm:$0xff]   ;;  %v3198_v47 = vld [vmem:[%s3894_s4 + $0x8] ss:$12 sps:$4 sm:$0xff]   ;;  %s1607_s14 = sadd.s32 5, %s2984_s13 }
  0x29   : > { %2501 = vmatmul.mubr.msk.bf16.vlgmr.msra.gmra.mxu1 %vm404_vm0, %v344_v17  ;;  %574 = vperm.xlu0 %2713, %v572_v33   ;;  %v610_v44 = vpack.c.bf16 %v3162_v42, %v3162_v42  ;;  %v3179_v45 = vld [vmem:[%s3894_s4 + $0x38] ss:$12 sps:$4 sm:$0xff]   ;;  %v3189_v46 = vld [vmem:[%s3894_s4 + $0x20] ss:$12 sps:$4 sm:$0xff]   ;;  %s1781_s15 = sadd.s32 6, %s2984_s13  ;;  %s1955_s16 = sadd.s32 7, %s2984_s13 }
  0x2a   : > { %2509 = vmatpush3.bf16.msra.mxu1 %v3082_v25  ;;  %2504 = vmatprep.mubr.msk.bf16.mxu1 %vm404_vm0, %v345_v27  ;;  %v355_v51 = vld [vmem:[%s3893_s3] sm:$0x7]  ;;  %p2412_p10 = scmp.ne.s32.totalorder %s2888_s26, 1 }
  0x2b   : > { %742 = vmatpush1.bf16.msra.mxu0 %v3032_v12  ;;  %2510 = vmatprep.subr.bf16.mxu1 %v3900_v26  ;;  %v360_v55 = vrot.slane %v355_v51, %v359_v50  ;;  %v364_v57 = vrot.slane %v355_v51, %v363_v53  ;;  %v3250_v1 = vrot.slane %v355_v51, %v3902_v60 }
  0x2c   : > { %743 = vmatprep.subr.bf16.mxu0 %v3043_v15 }
  0x2e   : > { %2332 = vmatmul.mubr.msk.bf16.gmra.mxu0 %vm404_vm0, %v344_v17  ;;  %2511 = vmatpush3.bf16.msra.mxu1 %v3102_v30 }
  0x2f   : > { %744 = vmatpush1.bf16.msra.mxu0 %v3052_v18  ;;  %469 = vmatprep.mubr.bf16.mxu0 %v3898_v3 }
  0x30   : > { %745 = vmatprep.subr.bf16.mxu0 %v3058_v19  ;;  %2512 = vmatprep.subr.bf16.mxu1 %v3900_v26 }
  0x31   : > { %2505 = vmatmul.mubr.msk.bf16.gmra.mxu1 %vm404_vm0, %v346_v37 }
  0x32   : > { %2513 = vmatpush3.bf16.msra.mxu1 %v3129_v36  ;;  %2524 = vmatprep.mubr.msk.bf16.mxu1 %vm2901_vm1, %v3900_v26 }
  0x33   : > { %746 = vmatpush1.bf16.msra.mxu0 %v3066_v21  ;;  %2514 = vmatprep.subr.bf16.mxu1 %v3900_v26 }
  0x34   : > { %747 = vmatprep.subr.bf16.mxu0 %v3076_v24 }
  0x36   : > { %2333 = vmatmul.mubr.msk.bf16.gmra.mxu0 %vm404_vm0, %v345_v27  ;;  %2515 = vmatpush3.bf16.msra.mxu1 %v3149_v40 }
  0x37   : > { %748 = vmatpush1.bf16.msra.mxu0 %v3088_v28  ;;  %479 = vmatprep.mubr.bf16.mxu0 %v3898_v3 }
  0x38   : > { %749 = vmatprep.subr.bf16.mxu0 %v3094_v29  ;;  %2516 = vmatprep.subr.bf16.mxu1 %v3900_v26 }
  0x3a   : > { %2517 = vmatpush3.bf16.msra.mxu1 %v3169_v43 }
  0x3b   : > { %750 = vmatpush1.bf16.msra.mxu0 %v3116_v34  ;;  %2518 = vmatprep.subr.bf16.mxu1 %v3900_v26 }
  0x3c   : > { %751 = vmatprep.subr.bf16.mxu0 %v3123_v35 }
  0x3e   : > { %2334 = vmatmul.mubr.msk.bf16.gmra.mxu0 %vm404_vm0, %v346_v37  ;;  %2519 = vmatpush3.bf16.msra.mxu1 %v3179_v45 }
  0x3f   : > { %752 = vmatpush1.bf16.msra.mxu0 %v3136_v38  ;;  %771 = vmatprep.mubr.bf16.mxu0 %v3898_v3 }
  0x40   : > { %753 = vmatprep.subr.bf16.mxu0 %v3143_v39  ;;  %2520 = vmatprep.subr.bf16.mxu1 %v3900_v26 }
  0x42   : > { %2521 = vmatpush3.bf16.msra.mxu1 %v3189_v46 }
  0x43   : > { %754 = vmatpush1.bf16.msra.mxu0 %v3159_v41  ;;  %2522 = vmatprep.subr.bf16.mxu1 %v3900_v26 }
  0x44   : > { %913 = vmatprep.subr.bf16.mxu0 %v3015_v9 }
  0x46   : > { %772 = vmatmul.mubr.bf16.vlgmr.msra.gmra.mxu0 %v610_v44  ;;  %2523 = vmatpush3.bf16.msra.mxu1 %v3198_v47 }
  0x47   : > { %914 = vmatpush1.bf16.msra.mxu0 %v3021_v10  ;;  %945 = vmatprep.mubr.bf16.mxu0 %v3898_v3 }
  0x48   : > { %915 = vmatprep.subr.bf16.mxu0 %v3027_v11  ;;  %2528 = vmatprep.subr.bf16.mxu1 %v3900_v26 }
  0x49   : > { %2525 = vmatmul.mubr.bf16.vlgmr.msra.gmra.mxu1 %v610_v44 }
  0x4a   : > { %2529 = vmatpush3.bf16.msra.mxu1 %v3082_v25  ;;  %2544 = vmatprep.mubr.msk.bf16.mxu1 %vm2901_vm1, %v3900_v26 }
  0x4b   : > { %916 = vmatpush1.bf16.msra.mxu0 %v3032_v12  ;;  %2530 = vmatprep.subr.bf16.mxu1 %v3900_v26 }
  0x4c   : > { %917 = vmatprep.subr.bf16.mxu0 %v3043_v15 }
  0x4e   : > { %2531 = vmatpush3.bf16.msra.mxu1 %v3102_v30 }
  0x4f   : > { %918 = vmatpush1.bf16.msra.mxu0 %v3052_v18  ;;  %2532 = vmatprep.subr.bf16.mxu1 %v3900_v26 }
  0x50   : > { %919 = vmatprep.subr.bf16.mxu0 %v3058_v19 }
  0x52   : > { %2533 = vmatpush3.bf16.msra.mxu1 %v3129_v36 }
  0x53   : > { %920 = vmatpush1.bf16.msra.mxu0 %v3066_v21  ;;  %2534 = vmatprep.subr.bf16.mxu1 %v3900_v26 }
  0x54   : > { %921 = vmatprep.subr.bf16.mxu0 %v3076_v24 }
  0x56   : > { %2535 = vmatpush3.bf16.msra.mxu1 %v3149_v40 }
  0x57   : > { %922 = vmatpush1.bf16.msra.mxu0 %v3088_v28  ;;  %2536 = vmatprep.subr.bf16.mxu1 %v3900_v26 }
  0x58   : > { %923 = vmatprep.subr.bf16.mxu0 %v3094_v29 }
  0x5a   : > { %2537 = vmatpush3.bf16.msra.mxu1 %v3169_v43 }
  0x5b   : > { %924 = vmatpush1.bf16.msra.mxu0 %v3116_v34  ;;  %2538 = vmatprep.subr.bf16.mxu1 %v3900_v26 }
  0x5c   : > { %925 = vmatprep.subr.bf16.mxu0 %v3123_v35 }
  0x5e   : > { %2539 = vmatpush3.bf16.msra.mxu1 %v3179_v45 }
  0x5f   : > { %926 = vmatpush1.bf16.msra.mxu0 %v3136_v38  ;;  %2540 = vmatprep.subr.bf16.mxu1 %v3900_v26 }
  0x60   : > { %927 = vmatprep.subr.bf16.mxu0 %v3143_v39 }
  0x62   : > { %2541 = vmatpush3.bf16.msra.mxu1 %v3189_v46 }
  0x63   : > { %928 = vmatpush1.bf16.msra.mxu0 %v3159_v41  ;;  %2542 = vmatprep.subr.bf16.mxu1 %v3900_v26 }
  0x64   : > { %1087 = vmatprep.subr.bf16.mxu0 %v3015_v9 }
  0x66   : > { %2543 = vmatpush3.bf16.msra.mxu1 %v3198_v47 }
  0x67   : > { %2548 = vmatprep.subr.bf16.mxu1 %v3900_v26 }
  0xe6   : > { %v451_v52 = vpop.f32.mrf.mxu0 }
  0xe7   : > { %v452_v60 = vadd.f32 %v451_v52, %v360_v55 }
  0xe8   : > { %v453_v54 = vpop.f32.mrf.mxu0 }
  0xe9   : > { %v2502_v6 = vpop.f32.mrf.mxu1 }
  0xea   : > { %v455_v56 = vpop.f32.mrf.mxu0  ;;  %v3257_v8 = vadd.f32 %v2502_v6, %v3250_v1 }
  0xeb   : > { %v3241_v58 = vadd.f32 %v455_v56, %v360_v55  ;;  %v524_v14 = vpop.f32.mrf.mxu1 }
  0xec   : > { %v457_v59 = vpop.f32.mrf.mxu0 }
  0xed   : > { %v3244_v61 = vadd.f32 %v457_v59, %v364_v57  ;;  %v2503_v20 = vpop.f32.mrf.mxu1 }
  0xee   : > { %v461_v62 = vpop.f32.mrf.mxu0  ;;  %v3264_v23 = vadd.f32 %v2503_v20, %v3250_v1 }
  0xef   : > { %v3246_v63 = vadd.f32 %v461_v62, %v360_v55  ;;  %v527_v31 = vpop.f32.mrf.mxu1 }
  0xf0   : > { %v463_v0 = vpop.f32.mrf.mxu0  ;;  %v3269_v33 = vadd.f32 %v527_v31, %v3250_v1 }
  0xf1   : > { %v3252_v2 = vadd.f32 %v463_v0, %v364_v57  ;;  %v2506_v44 = vpop.f32.mrf.mxu1 }
  0xf2   : > { %v465_v4 = vpop.f32.mrf.mxu0  ;;  %v3274_v51 = vadd.f32 %v2506_v44, %v3250_v1 }
  0xf3   : > { %v3254_v5 = vadd.f32 %v465_v4, %v360_v55  ;;  %v540_v59 = vpop.f32.mrf.mxu1 }
  0xf4   : > { %v467_v7 = vpop.f32.mrf.mxu0  ;;  %3904 = vst [vmem:[#allocation4_spill] sm:$0xff] %v3274_v51  ;;  %v3279_v0 = vadd.f32 %v540_v59, %v3250_v1 }
  0xf5   : > { %v3259_v13 = vadd.f32 %v467_v7, %v364_v57  ;;  %v2507_v6 = vpop.f32.mrf.mxu1 }
  0xf6   : > { %v471_v16 = vpop.f32.mrf.mxu0  ;;  %v3287_v20 = vadd.f32 %v2507_v6, %v3250_v1 }
  0xf7   : > { %v3261_v17 = vadd.f32 %v471_v16, %v360_v55  ;;  %v555_v16 = vld [vmem:[%s3895_s5] sm:$0x7]  ;;  %v543_v31 = vpop.f32.mrf.mxu1 }
  0xf8   : > { %v473_v22 = vpop.f32.mrf.mxu0  ;;  %3907 = vst [vmem:[#allocation7_spill] sm:$0xff] %v3287_v20  ;;  %v3292_v44 = vadd.f32 %v543_v31, %v3250_v1  ;;  %v3296_v59 = vrot.slane %v555_v16, %v359_v50  ;;  %v3301_v6 = vrot.slane %v555_v16, %v363_v53  ;;  %v3912_v53 = vsub.s32 2, %v3234_v49 }
  0xf9   : > { %v3266_v27 = vadd.f32 %v473_v22, %v364_v57 }
  0xfa   : > { %v475_v32 = vpop.f32.mrf.mxu0  ;;  %3909 = vst [vmem:[#allocation9_spill] sm:$0xff] %v3292_v44 }
  0xfb   : > { %v3271_v37 = vadd.f32 %v475_v32, %v360_v55 }
  0xfc   : > { %v477_v48 = vpop.f32.mrf.mxu0 }
  0xfd   : > { %v3276_v56 = vadd.f32 %v477_v48, %v364_v57 }
  0xfe   : > { %v481_v62 = vpop.f32.mrf.mxu0 }
  0xff   : > { %3905 = vst [vmem:[#allocation5_spill] sm:$0xff] %v3276_v56  ;;  %v3281_v4 = vadd.f32 %v481_v62, %v360_v55 }
 0x100   : > { %v483_v7 = vpop.f32.mrf.mxu0 }
 0x101   : > { %3906 = vst [vmem:[#allocation6_spill] sm:$0xff] %v3281_v4  ;;  %v3289_v22 = vadd.f32 %v483_v7, %v364_v57 }
 0x102   : > { %v485_v32 = vpop.f32.mrf.mxu0 }
 0x103   : > { %3908 = vst [vmem:[#allocation8_spill] sm:$0xff] %v3289_v22  ;;  %v3294_v48 = vadd.f32 %v485_v32, %v360_v55  ;;  %v454_v32 = vadd.f32 %v453_v54, %v364_v57 }
 0x104   : > { %v487_v62 = vpop.f32.mrf.mxu0 }
 0x105   : > { %3910 = vst [vmem:[#allocation10_spill] sm:$0xff] %v3294_v48  ;;  %v3298_v3 = vadd.f32 %v487_v62, %v364_v57 }
 0x106   : > { %v773_v26 = vpop.f32.mrf.mxu0 }
 0x107   : > { %3911 = vst [vmem:[#allocation11_spill] sm:$0xff] %v3298_v3  ;;  %v774_v51 = vadd.f32 %v773_v26, %v3296_v59 }
 0x108   : > { %v775_v7 = vpop.f32.mrf.mxu0 }
 0x109   : > { %v820_v20 = vadd.f32 %v774_v51, %v452_v60  ;;  %v776_v31 = vadd.f32 %v775_v7, %v3301_v6  ;;  %v814_v56 = vpop.f32.mrf.mxu1  ;;  %v3306_v60 = vrot.slane %v555_v16, %v3912_v53 }
 0x10a   : > { %v777_v22 = vpop.f32.mrf.mxu0 }
 0x10b   : > { %v2364_v4 = vmul.f32 -1.442695, %v820_v20  ;;  %v827_v50 = vadd.f32 %v776_v31, %v454_v32  ;;  %v2526_v62 = vpop.f32.mrf.mxu1  ;;  %v815_v54 = vadd.f32 %v814_v56, %v3306_v60  ;;  %v3310_v32 = vpop.permute.xlu0 %574 }
 0x10c   : > { %v778_v44 = vpop.f32.mrf.mxu0 }
 0x10d   : > { %2754 = vpow2.f32 %v2364_v4  ;;  %v2365_v48 = vmul.f32 -1.442695, %v827_v50  ;;  %v817_v3 = vpop.f32.mrf.mxu1  ;;  %v525_v4 = vadd.f32 %v524_v14, %v3250_v1  ;;  %v841_v50 = vstv %s2984_s13 }
 0x10e   : > { %v2902_v3 = vmov 1966171168   ;;  %vm842_vm2 = vcmp.lt.s32.totalorder %v841_v50, %v3310_v32 }
 0x10f   : > { %2756 = vpow2.f32 %v2365_v48  ;;  %v2527_v52 = vpop.f32.mrf.mxu1  ;;  %v847_v48 = vunpack.c.l.s4 %v2902_v3  ;;  %v3913_v3 = vmov 0.0  }
 0x111   : > { %v848_v31 = vunpack.c.0.s8 %v847_v48  ;;  %v3914_v48 = vmov 0  }
 0x113   : > { %v3316_v1 = vsub.s32 %v848_v31, %v3234_v49 }
 0x11a   : > { %v2755_v55 = vpop.eup %2754 }
 0x11b   : > { %v824_v26 = vadd.f32 1.0, %v2755_v55 }
 0x11c   : > { %v2757_v51 = vpop.eup %2756 }
 0x11d   : > { %2758 = vrcp.f32 %v824_v26  ;;  %v831_v20 = vadd.f32 1.0, %v2757_v51 }
 0x11f   : > { %2760 = vrcp.f32 %v831_v20 }
 0x12a   : > { %v2759_v57 = vpop.eup %2758 }
 0x12b   : > { %v834_v22 = vmul.f32 %v2759_v57, %v815_v54 }
 0x12c   : > { %v2761_v7 = vpop.eup %2760 }
 0x12d   : > { %v835_v44 = vadd.f32 %v834_v22, %v525_v4  ;;  %v837_v16 = vsub.f32 1.0, %v2761_v7  ;;  %v839_v56 = vmul.f32 %v2761_v7, %v3162_v42 }
 0x12f   : > { %2762 = vtanh.f32 %v835_v44 }
 0x13c   : > { %v2763_v62 = vpop.eup %2762 }
 0x13d   : > { %v838_v52 = vmul.f32 %v2763_v62, %v837_v16 }
 0x13f   : > { %v840_v14 = vadd.f32 %v839_v56, %v838_v52 }
 0x141   : > { %v843_v55 = vsel %vm842_vm2, %v840_v14, 0.0  ;;  %v3319_v26 = vsel %vm842_vm2, %v840_v14, %v3162_v42 }
 0x142   : > { %v845_v53 = vcombine.high %v843_v55, %v843_v55  ;;  %v852_v51 = vrot.slane %v843_v55, %v3316_v1  ;;  %v912_v20 = vpack.c.bf16 %v3319_v26, %v3319_v26 }
 0x144   : > { %v859_v54 = vrot.slane %v845_v53, %v3316_v1  ;;  %v860_v57 = vcombine.high %v852_v51, %v852_v51  ;;  %v868_v4 = vrot.slane %v852_v51, %v3316_v1  ;;  %2366 = vst.sshfl [vmem:[%s2993_s20] sm:$0x1 pattern:$0x73625140] %v852_v51  ;;  %946 = vmatmul.mubr.bf16.vlgmr.msra.gmra.mxu0 %v912_v20 }
 0x145   : > { %2545 = vmatmul.mubr.bf16.vlgmr.msra.gmra.mxu1 %v912_v20  ;;  %1088 = vmatpush1.bf16.msra.mxu0 %v3021_v10 }
 0x146   : > { %2549 = vmatpush3.bf16.msra.mxu1 %v3082_v25  ;;  %v861_v42 = vcombine.high %v859_v54, %v859_v54  ;;  %v875_v49 = vrot.slane %v859_v54, %v3316_v1  ;;  %v882_v22 = vrot.slane %v860_v57, %v3316_v1  ;;  %v890_v44 = vcombine.high %v868_v4, %v868_v4 }
 0x147   : > { %2367 = vst.sshfl [vmem:[%s2993_s20 + $0x8] sm:$0x1 pattern:$0x73625140] %v860_v57  ;;  %1089 = vmatprep.subr.bf16.mxu0 %v3027_v11  ;;  %2550 = vmatprep.subr.bf16.mxu1 %v3913_v3 }
 0x148   : > { %2368 = vst.sshfl [vmem:[%s2993_s20 + $0x20] sm:$0x1 pattern:$0x73625140] %v859_v54  ;;  %1119 = vmatprep.mubr.bf16.mxu0 %v3914_v48  ;;  %v889_v7 = vrot.slane %v861_v42, %v3316_v1  ;;  %v891_v31 = vcombine.high %v875_v49, %v875_v49  ;;  %v892_v16 = vcombine.high %v882_v22, %v882_v22  ;;  %904 = vst [vmem:[%s2993_s20 + $0x10] sm:$0x1] %v890_v44 }
 0x149   : > { %2369 = vst.sshfl [vmem:[%s2993_s20 + $0x28] sm:$0x1 pattern:$0x73625140] %v861_v42  ;;  %2564 = vmatprep.mubr.msk.bf16.mxu1 %vm2901_vm1, %v3913_v3  ;;  %1090 = vmatpush1.bf16.msra.mxu0 %v3032_v12 }
 0x14a   : > { %2551 = vmatpush3.bf16.msra.mxu1 %v3102_v30  ;;  %v893_v50 = vcombine.high %v889_v7, %v889_v7  ;;  %905 = vst [vmem:[%s2993_s20 + $0x18] sm:$0x1] %v892_v16  ;;  %908 = vst [vmem:[%s2993_s20 + $0x30] sm:$0x1] %v891_v31  ;;  %1091 = vmatprep.subr.bf16.mxu0 %v3043_v15 }
 0x14b   : > { %2552 = vmatprep.subr.bf16.mxu1 %v3913_v3 }
 0x14c   : > { %909 = vst [vmem:[%s2993_s20 + $0x38] sm:$0x1] %v893_v50 }
 0x14d   : > { %1092 = vmatpush1.bf16.msra.mxu0 %v3052_v18 }
 0x14e   : > { %2553 = vmatpush3.bf16.msra.mxu1 %v3129_v36  ;;  %1093 = vmatprep.subr.bf16.mxu0 %v3058_v19 }
 0x14f   : > { %2554 = vmatprep.subr.bf16.mxu1 %v3913_v3 }
 0x151   : > { %1094 = vmatpush1.bf16.msra.mxu0 %v3066_v21 }
 0x152   : > { %2555 = vmatpush3.bf16.msra.mxu1 %v3149_v40  ;;  %1095 = vmatprep.subr.bf16.mxu0 %v3076_v24 }
 0x153   : > { %2556 = vmatprep.subr.bf16.mxu1 %v3913_v3 }
 0x155   : > { %1096 = vmatpush1.bf16.msra.mxu0 %v3088_v28 }
 0x156   : > { %2557 = vmatpush3.bf16.msra.mxu1 %v3169_v43  ;;  %1097 = vmatprep.subr.bf16.mxu0 %v3094_v29 }
 0x157   : > { %2558 = vmatprep.subr.bf16.mxu1 %v3913_v3 }
 0x159   : > { %1098 = vmatpush1.bf16.msra.mxu0 %v3116_v34 }
 0x15a   : > { %2559 = vmatpush3.bf16.msra.mxu1 %v3179_v45  ;;  %1099 = vmatprep.subr.bf16.mxu0 %v3123_v35 }
 0x15b   : > { %2560 = vmatprep.subr.bf16.mxu1 %v3913_v3 }
 0x15d   : > { %1100 = vmatpush1.bf16.msra.mxu0 %v3136_v38 }
 0x15e   : > { %2561 = vmatpush3.bf16.msra.mxu1 %v3189_v46  ;;  %1101 = vmatprep.subr.bf16.mxu0 %v3143_v39 }
 0x15f   : > { %2562 = vmatprep.subr.bf16.mxu1 %v3913_v3 }
 0x161   : > { %1102 = vmatpush1.bf16.msra.mxu0 %v3159_v41 }
 0x162   : > { %2563 = vmatpush3.bf16.msra.mxu1 %v3198_v47  ;;  %1261 = vmatprep.subr.bf16.mxu0 %v3015_v9 }
 0x163   : > { %2568 = vmatprep.subr.bf16.mxu1 %v3913_v3 }
 0x204   : > { %v947_v62 = vpop.f32.mrf.mxu0 }
 0x205   : > { %v988_v52 = vpop.f32.mrf.mxu1  ;;  %v948_v56 = vadd.f32 %v947_v62, %v3296_v59 }
 0x206   : > { %v949_v14 = vpop.f32.mrf.mxu0 }
 0x207   : > { %v2546_v55 = vpop.f32.mrf.mxu1  ;;  %v994_v53 = vadd.f32 %v948_v56, %v3241_v58  ;;  %v950_v57 = vadd.f32 %v949_v14, %v3301_v6  ;;  %v989_v58 = vadd.f32 %v988_v52, %v3306_v60 }
 0x208   : > { %v951_v51 = vpop.f32.mrf.mxu0 }
 0x209   : > { %v991_v20 = vpop.f32.mrf.mxu1  ;;  %v2370_v54 = vmul.f32 -1.442695, %v994_v53  ;;  %v1001_v49 = vadd.f32 %v950_v57, %v3244_v61 }
 0x20a   : > { %v952_v4 = vpop.f32.mrf.mxu0  ;;  %v1015_v20 = vstv %s911_s18 }
 0x20b   : > { %v2547_v42 = vpop.f32.mrf.mxu1  ;;  %2764 = vpow2.f32 %v2370_v54  ;;  %v2371_v22 = vmul.f32 -1.442695, %v1001_v49  ;;  %vm1016_vm3 = vcmp.lt.s32.totalorder %v1015_v20, %v3310_v32 }
 0x20d   : > { %2766 = vpow2.f32 %v2371_v22 }
 0x218   : > { %v2765_v44 = vpop.eup %2764 }
 0x219   : > { %v998_v7 = vadd.f32 1.0, %v2765_v44 }
 0x21a   : > { %v2767_v31 = vpop.eup %2766 }
 0x21b   : > { %2768 = vrcp.f32 %v998_v7  ;;  %v1005_v16 = vadd.f32 1.0, %v2767_v31 }
 0x21d   : > { %2770 = vrcp.f32 %v1005_v16 }
 0x228   : > { %v2769_v50 = vpop.eup %2768 }
 0x229   : > { %v1008_v62 = vmul.f32 %v2769_v50, %v989_v58 }
 0x22a   : > { %v2771_v14 = vpop.eup %2770 }
 0x22b   : > { %v1009_v56 = vadd.f32 %v1008_v62, %v3269_v33  ;;  %v1011_v55 = vsub.f32 1.0, %v2771_v14  ;;  %v1013_v51 = vmul.f32 %v2771_v14, %v3319_v26 }
 0x22d   : > { %2772 = vtanh.f32 %v1009_v56 }
 0x23a   : > { %v2773_v61 = vpop.eup %2772 }
 0x23b   : > { %v1012_v53 = vmul.f32 %v2773_v61, %v1011_v55 }
 0x23d   : > { %v1014_v54 = vadd.f32 %v1013_v51, %v1012_v53 }
 0x23f   : > { %v1017_v57 = vsel %vm1016_vm3, %v1014_v54, 0.0  ;;  %v3382_v52 = vsel %vm1016_vm3, %v1014_v54, %v3319_v26 }
 0x240   : > { %v1019_v4 = vcombine.high %v1017_v57, %v1017_v57  ;;  %v1026_v33 = vrot.slane %v1017_v57, %v3316_v1  ;;  %v1086_v42 = vpack.c.bf16 %v3382_v52, %v3382_v52 }
 0x242   : > { %v1033_v49 = vrot.slane %v1019_v4, %v3316_v1  ;;  %v1034_v22 = vcombine.high %v1026_v33, %v1026_v33  ;;  %v1042_v44 = vrot.slane %v1026_v33, %v3316_v1  ;;  %2372 = vst.sshfl [vmem:[%s2993_s20 + $0x1] sm:$0x1 pattern:$0x73625140] %v1026_v33  ;;  %1120 = vmatmul.mubr.bf16.vlgmr.msra.gmra.mxu0 %v1086_v42 }
 0x243   : > { %2565 = vmatmul.mubr.bf16.vlgmr.msra.gmra.mxu1 %v1086_v42  ;;  %1262 = vmatpush1.bf16.msra.mxu0 %v3021_v10 }
 0x244   : > { %2569 = vmatpush3.bf16.msra.mxu1 %v3082_v25  ;;  %v1035_v26 = vcombine.high %v1033_v49, %v1033_v49  ;;  %v1049_v7 = vrot.slane %v1033_v49, %v3316_v1  ;;  %v1056_v31 = vrot.slane %v1034_v22, %v3316_v1  ;;  %v1064_v16 = vcombine.high %v1042_v44, %v1042_v44 }
 0x245   : > { %2373 = vst.sshfl [vmem:[%s2993_s20 + $0x9] sm:$0x1 pattern:$0x73625140] %v1034_v22  ;;  %1263 = vmatprep.subr.bf16.mxu0 %v3027_v11  ;;  %2570 = vmatprep.subr.bf16.mxu1 %v3913_v3 }
 0x246   : > { %2374 = vst.sshfl [vmem:[%s2993_s20 + $0x21] sm:$0x1 pattern:$0x73625140] %v1033_v49  ;;  %1293 = vmatprep.mubr.bf16.mxu0 %v3914_v48  ;;  %v1063_v58 = vrot.slane %v1035_v26, %v3316_v1  ;;  %v1065_v50 = vcombine.high %v1049_v7, %v1049_v7  ;;  %v1066_v62 = vcombine.high %v1056_v31, %v1056_v31  ;;  %1078 = vst [vmem:[%s2993_s20 + $0x11] sm:$0x1] %v1064_v16 }
 0x247   : > { %2375 = vst.sshfl [vmem:[%s2993_s20 + $0x29] sm:$0x1 pattern:$0x73625140] %v1035_v26  ;;  %2584 = vmatprep.mubr.msk.bf16.mxu1 %vm2901_vm1, %v3913_v3  ;;  %1264 = vmatpush1.bf16.msra.mxu0 %v3032_v12 }
 0x248   : > { %2571 = vmatpush3.bf16.msra.mxu1 %v3102_v30  ;;  %v1067_v56 = vcombine.high %v1063_v58, %v1063_v58  ;;  %1079 = vst [vmem:[%s2993_s20 + $0x19] sm:$0x1] %v1066_v62  ;;  %1082 = vst [vmem:[%s2993_s20 + $0x31] sm:$0x1] %v1065_v50  ;;  %1265 = vmatprep.subr.bf16.mxu0 %v3043_v15 }
 0x249   : > { %2572 = vmatprep.subr.bf16.mxu1 %v3913_v3 }
 0x24a   : > { %1083 = vst [vmem:[%s2993_s20 + $0x39] sm:$0x1] %v1067_v56 }
 0x24b   : > { %1266 = vmatpush1.bf16.msra.mxu0 %v3052_v18 }
 0x24c   : > { %2573 = vmatpush3.bf16.msra.mxu1 %v3129_v36  ;;  %1267 = vmatprep.subr.bf16.mxu0 %v3058_v19 }
 0x24d   : > { %2574 = vmatprep.subr.bf16.mxu1 %v3913_v3 }
 0x24f   : > { %1268 = vmatpush1.bf16.msra.mxu0 %v3066_v21 }
 0x250   : > { %2575 = vmatpush3.bf16.msra.mxu1 %v3149_v40  ;;  %1269 = vmatprep.subr.bf16.mxu0 %v3076_v24 }
 0x251   : > { %2576 = vmatprep.subr.bf16.mxu1 %v3913_v3 }
 0x253   : > { %1270 = vmatpush1.bf16.msra.mxu0 %v3088_v28 }
 0x254   : > { %2577 = vmatpush3.bf16.msra.mxu1 %v3169_v43  ;;  %1271 = vmatprep.subr.bf16.mxu0 %v3094_v29 }
 0x255   : > { %2578 = vmatprep.subr.bf16.mxu1 %v3913_v3 }
 0x257   : > { %1272 = vmatpush1.bf16.msra.mxu0 %v3116_v34 }
 0x258   : > { %2579 = vmatpush3.bf16.msra.mxu1 %v3179_v45  ;;  %1273 = vmatprep.subr.bf16.mxu0 %v3123_v35 }
 0x259   : > { %2580 = vmatprep.subr.bf16.mxu1 %v3913_v3 }
 0x25b   : > { %1274 = vmatpush1.bf16.msra.mxu0 %v3136_v38 }
 0x25c   : > { %2581 = vmatpush3.bf16.msra.mxu1 %v3189_v46  ;;  %1275 = vmatprep.subr.bf16.mxu0 %v3143_v39 }
 0x25d   : > { %2582 = vmatprep.subr.bf16.mxu1 %v3913_v3 }
 0x25f   : > { %1276 = vmatpush1.bf16.msra.mxu0 %v3159_v41 }
 0x260   : > { %2583 = vmatpush3.bf16.msra.mxu1 %v3198_v47  ;;  %1435 = vmatprep.subr.bf16.mxu0 %v3015_v9 }
 0x261   : > { %2588 = vmatprep.subr.bf16.mxu1 %v3913_v3 }
 0x302   : > { %v1121_v14 = vpop.f32.mrf.mxu0 }
 0x303   : > { %v1162_v55 = vpop.f32.mrf.mxu1  ;;  %v1122_v61 = vadd.f32 %v1121_v14, %v3296_v59 }
 0x304   : > { %v1123_v53 = vpop.f32.mrf.mxu0 }
 0x305   : > { %v2566_v51 = vpop.f32.mrf.mxu1  ;;  %v1168_v20 = vadd.f32 %v1122_v61, %v3246_v63  ;;  %v1124_v33 = vadd.f32 %v1123_v53, %v3301_v6  ;;  %v1163_v63 = vadd.f32 %v1162_v55, %v3306_v60  ;;  %v1189_v53 = vstv %s1085_s21  ;;  %s1433_s21 = sadd.s32 4, %s2984_s13 }
 0x306   : > { %v1125_v54 = vpop.f32.mrf.mxu0  ;;  %vm1190_vm4 = vcmp.lt.s32.totalorder %v1189_v53, %v3310_v32 }
 0x307   : > { %v1165_v57 = vpop.f32.mrf.mxu1  ;;  %v2376_v4 = vmul.f32 -1.442695, %v1168_v20  ;;  %v1175_v9 = vadd.f32 %v1124_v33, %v3252_v2 }
 0x308   : > { %v1126_v42 = vpop.f32.mrf.mxu0 }
 0x309   : > { %v2567_v49 = vpop.f32.mrf.mxu1  ;;  %2774 = vpow2.f32 %v2376_v4  ;;  %v2377_v22 = vmul.f32 -1.442695, %v1175_v9 }
 0x30b   : > { %2776 = vpow2.f32 %v2377_v22 }
 0x316   : > { %v2775_v44 = vpop.eup %2774 }
 0x317   : > { %v1172_v26 = vadd.f32 1.0, %v2775_v44 }
 0x318   : > { %v2777_v7 = vpop.eup %2776 }
 0x319   : > { %2778 = vrcp.f32 %v1172_v26  ;;  %v1179_v31 = vadd.f32 1.0, %v2777_v7 }
 0x31b   : > { %2780 = vrcp.f32 %v1179_v31 }
 0x326   : > { %v2779_v16 = vpop.eup %2778 }
 0x327   : > { %v1182_v58 = vmul.f32 %v2779_v16, %v1163_v63 }
 0x328   : > { %v2781_v62 = vpop.eup %2780 }
 0x329   : > { %v1183_v50 = vadd.f32 %v1182_v58, %v3257_v8  ;;  %v1185_v56 = vsub.f32 1.0, %v2781_v62  ;;  %v1187_v61 = vmul.f32 %v2781_v62, %v3382_v52 }
 0x32b   : > { %2782 = vtanh.f32 %v1183_v50 }
 0x338   : > { %v2783_v2 = vpop.eup %2782 }
 0x339   : > { %v1186_v14 = vmul.f32 %v2783_v2, %v1185_v56 }
 0x33b   : > { %v1188_v51 = vadd.f32 %v1187_v61, %v1186_v14 }
 0x33d   : > { %v1191_v20 = vsel %vm1190_vm4, %v1188_v51, 0.0  ;;  %v3445_v55 = vsel %vm1190_vm4, %v1188_v51, %v3382_v52 }
 0x33e   : > { %v1193_v54 = vcombine.high %v1191_v20, %v1191_v20  ;;  %v1200_v8 = vrot.slane %v1191_v20, %v3316_v1  ;;  %v1260_v57 = vpack.c.bf16 %v3445_v55, %v3445_v55 }
 0x340   : > { %v1207_v4 = vrot.slane %v1193_v54, %v3316_v1  ;;  %v1208_v33 = vcombine.high %v1200_v8, %v1200_v8  ;;  %v1216_v42 = vrot.slane %v1200_v8, %v3316_v1  ;;  %2378 = vst.sshfl [vmem:[%s2993_s20 + $0x2] sm:$0x1 pattern:$0x73625140] %v1200_v8  ;;  %1294 = vmatmul.mubr.bf16.vlgmr.msra.gmra.mxu0 %v1260_v57 }
 0x341   : > { %2585 = vmatmul.mubr.bf16.vlgmr.msra.gmra.mxu1 %v1260_v57  ;;  %1436 = vmatpush1.bf16.msra.mxu0 %v3021_v10  ;;  %v1363_v57 = vstv %s1259_s24 }
 0x342   : > { %2589 = vmatpush3.bf16.msra.mxu1 %v3082_v25  ;;  %v1209_v52 = vcombine.high %v1207_v4, %v1207_v4  ;;  %v1223_v49 = vrot.slane %v1207_v4, %v3316_v1  ;;  %v1230_v9 = vrot.slane %v1208_v33, %v3316_v1  ;;  %v1238_v22 = vcombine.high %v1216_v42, %v1216_v42 }
 0x343   : > { %2379 = vst.sshfl [vmem:[%s2993_s20 + $0xa] sm:$0x1 pattern:$0x73625140] %v1208_v33  ;;  %1437 = vmatprep.subr.bf16.mxu0 %v3027_v11  ;;  %2590 = vmatprep.subr.bf16.mxu1 %v3913_v3  ;;  %v3499_v11 = vld [vmem:[%s3894_s4 + $0xac] ss:$12 sps:$4 sm:$0xff]   ;;  %vm1364_vm5 = vcmp.lt.s32.totalorder %v1363_v57, %v3310_v32 }
 0x344   : > { %2380 = vst.sshfl [vmem:[%s2993_s20 + $0x22] sm:$0x1 pattern:$0x73625140] %v1207_v4  ;;  %1467 = vmatprep.mubr.bf16.mxu0 %v3914_v48  ;;  %v1237_v10 = vrot.slane %v1209_v52, %v3316_v1  ;;  %v1239_v44 = vcombine.high %v1223_v49, %v1223_v49  ;;  %v1240_v26 = vcombine.high %v1230_v9, %v1230_v9  ;;  %1252 = vst [vmem:[%s2993_s20 + $0x12] sm:$0x1] %v1238_v22 }
 0x345   : > { %2381 = vst.sshfl [vmem:[%s2993_s20 + $0x2a] sm:$0x1 pattern:$0x73625140] %v1209_v52  ;;  %2604 = vmatprep.mubr.msk.bf16.mxu1 %vm2901_vm1, %v3913_v3  ;;  %1438 = vmatpush1.bf16.msra.mxu0 %v3032_v12 }
 0x346   : > { %2591 = vmatpush3.bf16.msra.mxu1 %v3102_v30  ;;  %v1241_v7 = vcombine.high %v1237_v10, %v1237_v10  ;;  %1253 = vst [vmem:[%s2993_s20 + $0x1a] sm:$0x1] %v1240_v26  ;;  %1256 = vst [vmem:[%s2993_s20 + $0x32] sm:$0x1] %v1239_v44  ;;  %1439 = vmatprep.subr.bf16.mxu0 %v3043_v15 }
 0x347   : > { %2592 = vmatprep.subr.bf16.mxu1 %v3913_v3 }
 0x348   : > { %1257 = vst [vmem:[%s2993_s20 + $0x3a] sm:$0x1] %v1241_v7 }
 0x349   : > { %1440 = vmatpush1.bf16.msra.mxu0 %v3052_v18 }
 0x34a   : > { %2593 = vmatpush3.bf16.msra.mxu1 %v3129_v36  ;;  %1441 = vmatprep.subr.bf16.mxu0 %v3058_v19 }
 0x34b   : > { %2594 = vmatprep.subr.bf16.mxu1 %v3913_v3 }
 0x34d   : > { %1442 = vmatpush1.bf16.msra.mxu0 %v3066_v21 }
 0x34e   : > { %2595 = vmatpush3.bf16.msra.mxu1 %v3149_v40  ;;  %1443 = vmatprep.subr.bf16.mxu0 %v3076_v24 }
 0x34f   : > { %2596 = vmatprep.subr.bf16.mxu1 %v3913_v3 }
 0x351   : > { %1444 = vmatpush1.bf16.msra.mxu0 %v3088_v28 }
 0x352   : > { %2597 = vmatpush3.bf16.msra.mxu1 %v3169_v43  ;;  %1445 = vmatprep.subr.bf16.mxu0 %v3094_v29 }
 0x353   : > { %2598 = vmatprep.subr.bf16.mxu1 %v3913_v3 }
 0x355   : > { %1446 = vmatpush1.bf16.msra.mxu0 %v3116_v34 }
 0x356   : > { %2599 = vmatpush3.bf16.msra.mxu1 %v3179_v45  ;;  %1447 = vmatprep.subr.bf16.mxu0 %v3123_v35 }
 0x357   : > { %2600 = vmatprep.subr.bf16.mxu1 %v3913_v3 }
 0x359   : > { %1448 = vmatpush1.bf16.msra.mxu0 %v3136_v38 }
 0x35a   : > { %2601 = vmatpush3.bf16.msra.mxu1 %v3189_v46  ;;  %1449 = vmatprep.subr.bf16.mxu0 %v3143_v39 }
 0x35b   : > { %2602 = vmatprep.subr.bf16.mxu1 %v3913_v3 }
 0x35d   : > { %1450 = vmatpush1.bf16.msra.mxu0 %v3159_v41 }
 0x35e   : > { %2603 = vmatpush3.bf16.msra.mxu1 %v3198_v47  ;;  %1609 = vmatprep.subr.bf16.mxu0 %v3499_v11 }
 0x35f   : > { %2608 = vmatprep.subr.bf16.mxu1 %v3913_v3 }
 0x400   : > { %v1295_v12 = vpop.f32.mrf.mxu0 }
 0x401   : > { %v1336_v15 = vpop.f32.mrf.mxu1  ;;  %v1296_v18 = vadd.f32 %v1295_v12, %v3296_v59 }
 0x402   : > { %v1297_v19 = vpop.f32.mrf.mxu0 }
 0x403   : > { %v2586_v21 = vpop.f32.mrf.mxu1  ;;  %v1342_v24 = vadd.f32 %v1296_v18, %v3254_v5  ;;  %v1298_v35 = vadd.f32 %v1297_v19, %v3301_v6  ;;  %v1337_v5 = vadd.f32 %v1336_v15, %v3306_v60  ;;  %v3535_v15 = vld [vmem:[%s3894_s4 + $0x94] ss:$12 sps:$4 sm:$0xff]  }
 0x404   : > { %v1299_v28 = vpop.f32.mrf.mxu0  ;;  %v3548_v21 = vld [vmem:[%s3894_s4 + $0x90] ss:$12 sps:$4 sm:$0xff]  }
 0x405   : > { %v1339_v29 = vpop.f32.mrf.mxu1  ;;  %v2382_v34 = vmul.f32 -1.442695, %v1342_v24  ;;  %v1349_v16 = vadd.f32 %v1298_v35, %v3259_v13  ;;  %v3557_v28 = vld [vmem:[%s3894_s4 + $0x7c] ss:$12 sps:$4 sm:$0xff]  }
 0x406   : > { %v1300_v31 = vpop.f32.mrf.mxu0  ;;  %v3565_v29 = vld [vmem:[%s3894_s4 + $0x78] ss:$12 sps:$4 sm:$0xff]   ;;  %v3593_v35 = vld [vmem:[%s3894_s4 + $0x48] ss:$12 sps:$4 sm:$0xff]  }
 0x407   : > { %v2587_v63 = vpop.f32.mrf.mxu1  ;;  %2784 = vpow2.f32 %v2382_v34  ;;  %v2383_v58 = vmul.f32 -1.442695, %v1349_v16  ;;  %v3579_v34 = vld [vmem:[%s3894_s4 + $0x60] ss:$12 sps:$4 sm:$0xff]   ;;  %v3607_v31 = vld [vmem:[%s3894_s4 + $0x30] ss:$12 sps:$4 sm:$0xff]  }
 0x409   : > { %2786 = vpow2.f32 %v2383_v58 }
 0x414   : > { %v2785_v50 = vpop.eup %2784 }
 0x415   : > { %v1346_v62 = vadd.f32 1.0, %v2785_v50 }
 0x416   : > { %v2787_v56 = vpop.eup %2786 }
 0x417   : > { %2788 = vrcp.f32 %v1346_v62  ;;  %v1353_v2 = vadd.f32 1.0, %v2787_v56 }
 0x419   : > { %2790 = vrcp.f32 %v1353_v2 }
 0x424   : > { %v2789_v14 = vpop.eup %2788 }
 0x425   : > { %v1356_v61 = vmul.f32 %v2789_v14, %v1337_v5 }
 0x426   : > { %v2791_v51 = vpop.eup %2790 }
 0x427   : > { %v1357_v53 = vadd.f32 %v1356_v61, %v3264_v23  ;;  %v1359_v20 = vsub.f32 1.0, %v2791_v51  ;;  %v1361_v8 = vmul.f32 %v2791_v51, %v3445_v55 }
 0x429   : > { %2792 = vtanh.f32 %v1357_v53 }
 0x436   : > { %v2793_v13 = vpop.eup %2792 }
 0x437   : > { %v1360_v54 = vmul.f32 %v2793_v13, %v1359_v20 }
 0x439   : > { %v1362_v4 = vadd.f32 %v1361_v8, %v1360_v54 }
 0x43b   : > { %v1365_v33 = vsel %vm1364_vm5, %v1362_v4, 0.0  ;;  %v3513_v42 = vsel %vm1364_vm5, %v1362_v4, %v3445_v55  ;;  %v3524_v55 = vld [vmem:[%s3894_s4 + $0xa8] ss:$12 sps:$4 sm:$0xff]  }
 0x43c   : > { %v1367_v52 = vcombine.high %v1365_v33, %v1365_v33  ;;  %v1374_v23 = vrot.slane %v1365_v33, %v3316_v1  ;;  %v1434_v49 = vpack.c.bf16 %v3513_v42, %v3513_v42 }
 0x43e   : > { %v1381_v9 = vrot.slane %v1367_v52, %v3316_v1  ;;  %v1382_v22 = vcombine.high %v1374_v23, %v1374_v23  ;;  %v1390_v10 = vrot.slane %v1374_v23, %v3316_v1  ;;  %2384 = vst.sshfl [vmem:[%s2993_s20 + $0x3] sm:$0x1 pattern:$0x73625140] %v1374_v23  ;;  %1468 = vmatmul.mubr.bf16.vlgmr.msra.gmra.mxu0 %v1434_v49  ;;  %v1537_v52 = vstv %s1433_s21 }
 0x43f   : > { %2605 = vmatmul.mubr.bf16.vlgmr.msra.gmra.mxu1 %v1434_v49  ;;  %1610 = vmatpush1.bf16.msra.mxu0 %v3524_v55  ;;  %vm1538_vm6 = vcmp.lt.s32.totalorder %v1537_v52, %v3310_v32 }
 0x440   : > { %2609 = vmatpush3.bf16.msra.mxu1 %v3082_v25  ;;  %v1383_v44 = vcombine.high %v1381_v9, %v1381_v9  ;;  %v1397_v26 = vrot.slane %v1381_v9, %v3316_v1  ;;  %v1404_v7 = vrot.slane %v1382_v22, %v3316_v1  ;;  %v1412_v12 = vcombine.high %v1390_v10, %v1390_v10 }
 0x441   : > { %2385 = vst.sshfl [vmem:[%s2993_s20 + $0xb] sm:$0x1 pattern:$0x73625140] %v1382_v22  ;;  %1611 = vmatprep.subr.bf16.mxu0 %v3535_v15  ;;  %2610 = vmatprep.subr.bf16.mxu1 %v3913_v3 }
 0x442   : > { %2386 = vst.sshfl [vmem:[%s2993_s20 + $0x23] sm:$0x1 pattern:$0x73625140] %v1381_v9  ;;  %1641 = vmatprep.mubr.bf16.mxu0 %v3914_v48  ;;  %v1411_v25 = vrot.slane %v1383_v44, %v3316_v1  ;;  %v1413_v18 = vcombine.high %v1397_v26, %v1397_v26  ;;  %v1414_v19 = vcombine.high %v1404_v7, %v1404_v7  ;;  %1426 = vst [vmem:[%s2993_s20 + $0x13] sm:$0x1] %v1412_v12 }
 0x443   : > { %2387 = vst.sshfl [vmem:[%s2993_s20 + $0x2b] sm:$0x1 pattern:$0x73625140] %v1383_v44  ;;  %2624 = vmatprep.mubr.msk.bf16.mxu1 %vm2901_vm1, %v3913_v3  ;;  %1612 = vmatpush1.bf16.msra.mxu0 %v3548_v21 }
 0x444   : > { %2611 = vmatpush3.bf16.msra.mxu1 %v3102_v30  ;;  %v1415_v24 = vcombine.high %v1411_v25, %v1411_v25  ;;  %1427 = vst [vmem:[%s2993_s20 + $0x1b] sm:$0x1] %v1414_v19  ;;  %1430 = vst [vmem:[%s2993_s20 + $0x33] sm:$0x1] %v1413_v18  ;;  %1613 = vmatprep.subr.bf16.mxu0 %v3557_v28  ;;  %v3572_v30 = vld [vmem:[%s3894_s4 + $0x64] ss:$12 sps:$4 sm:$0xff]  }
 0x445   : > { %2612 = vmatprep.subr.bf16.mxu1 %v3913_v3 }
 0x446   : > { %1431 = vst [vmem:[%s2993_s20 + $0x3b] sm:$0x1] %v1415_v24 }
 0x447   : > { %1614 = vmatpush1.bf16.msra.mxu0 %v3565_v29 }
 0x448   : > { %2613 = vmatpush3.bf16.msra.mxu1 %v3129_v36  ;;  %1615 = vmatprep.subr.bf16.mxu0 %v3572_v30  ;;  %v3586_v36 = vld [vmem:[%s3894_s4 + $0x4c] ss:$12 sps:$4 sm:$0xff]  }
 0x449   : > { %2614 = vmatprep.subr.bf16.mxu1 %v3913_v3 }
 0x44b   : > { %1616 = vmatpush1.bf16.msra.mxu0 %v3579_v34 }
 0x44c   : > { %2615 = vmatpush3.bf16.msra.mxu1 %v3149_v40  ;;  %1617 = vmatprep.subr.bf16.mxu0 %v3586_v36  ;;  %v3600_v40 = vld [vmem:[%s3894_s4 + $0x34] ss:$12 sps:$4 sm:$0xff]  }
 0x44d   : > { %2616 = vmatprep.subr.bf16.mxu1 %v3913_v3 }
 0x44f   : > { %1618 = vmatpush1.bf16.msra.mxu0 %v3593_v35 }
 0x450   : > { %2617 = vmatpush3.bf16.msra.mxu1 %v3169_v43  ;;  %1619 = vmatprep.subr.bf16.mxu0 %v3600_v40  ;;  %v3614_v43 = vld [vmem:[%s3894_s4 + $0x1c] ss:$12 sps:$4 sm:$0xff]  }
 0x451   : > { %2618 = vmatprep.subr.bf16.mxu1 %v3913_v3 }
 0x453   : > { %1620 = vmatpush1.bf16.msra.mxu0 %v3607_v31 }
 0x454   : > { %2619 = vmatpush3.bf16.msra.mxu1 %v3179_v45  ;;  %1621 = vmatprep.subr.bf16.mxu0 %v3614_v43 }
 0x455   : > { %2620 = vmatprep.subr.bf16.mxu1 %v3913_v3 }
 0x457   : > { %1622 = vmatpush1.bf16.msra.mxu0 %v3136_v38 }
 0x458   : > { %2621 = vmatpush3.bf16.msra.mxu1 %v3189_v46  ;;  %1623 = vmatprep.subr.bf16.mxu0 %v3143_v39 }
 0x459   : > { %2622 = vmatprep.subr.bf16.mxu1 %v3913_v3 }
 0x45b   : > { %1624 = vmatpush1.bf16.msra.mxu0 %v3159_v41 }
 0x45c   : > { %2623 = vmatpush3.bf16.msra.mxu1 %v3198_v47  ;;  %1783 = vmatprep.subr.bf16.mxu0 %v3499_v11 }
 0x45d   : > { %2628 = vmatprep.subr.bf16.mxu1 %v3913_v3 }
 0x4fe   : > { %v1469_v45 = vpop.f32.mrf.mxu0 }
 0x4ff   : > { %v1510_v63 = vpop.f32.mrf.mxu1  ;;  %v1470_v16 = vadd.f32 %v1469_v45, %v3296_v59 }
 0x500   : > { %v1471_v58 = vpop.f32.mrf.mxu0 }
 0x501   : > { %v2606_v38 = vpop.f32.mrf.mxu1  ;;  %v1516_v46 = vadd.f32 %v1470_v16, %v3261_v17  ;;  %v1472_v56 = vadd.f32 %v1471_v58, %v3301_v6  ;;  %v1511_v17 = vadd.f32 %v1510_v63, %v3306_v60  ;;  %v3667_v16 = vld [vmem:[%s3894_s4 + $0x98] ss:$12 sps:$4 sm:$0xff]  }
 0x502   : > { %v1473_v50 = vpop.f32.mrf.mxu0  ;;  %v3679_v38 = vld [vmem:[%s3894_s4 + $0x80] ss:$12 sps:$4 sm:$0xff]  }
 0x503   : > { %v1513_v39 = vpop.f32.mrf.mxu1  ;;  %v2388_v62 = vmul.f32 -1.442695, %v1516_v46  ;;  %v1523_v47 = vadd.f32 %v1472_v56, %v3266_v27  ;;  %v3688_v46 = vld [vmem:[%s3894_s4 + $0x68] ss:$12 sps:$4 sm:$0xff]   ;;  %v3697_v50 = vld [vmem:[%s3894_s4 + $0x50] ss:$12 sps:$4 sm:$0xff]  }
 0x504   : > { %v1474_v41 = vpop.f32.mrf.mxu0  ;;  %v3706_v39 = vld [vmem:[%s3894_s4 + $0x38] ss:$12 sps:$4 sm:$0xff]   ;;  %v3720_v56 = vld [vmem:[%s3894_s4 + $0x20] ss:$12 sps:$4 sm:$0xff]  }
 0x505   : > { %v2607_v2 = vpop.f32.mrf.mxu1  ;;  %2794 = vpow2.f32 %v2388_v62  ;;  %v2389_v5 = vmul.f32 -1.442695, %v1523_v47  ;;  %v3714_v62 = vld [vmem:[%s3894_s4 + $0x18] ss:$12 sps:$4 sm:$0xff]   ;;  %v3739_v47 = vld [vmem:[%s3894_s4 + $0x8] ss:$12 sps:$4 sm:$0xff]  }
 0x506   : > { %v3726_v41 = vld [vmem:[%s3894_s4 + $0x4] ss:$12 sps:$4 sm:$0xff]   ;;  %v3733_v2 = vld [vmem:[%s3894_s4] ss:$12 sps:$4 sm:$0xff]  }
 0x507   : > { %2796 = vpow2.f32 %v2389_v5 }
 0x512   : > { %v2795_v14 = vpop.eup %2794 }
 0x513   : > { %v1520_v61 = vadd.f32 1.0, %v2795_v14 }
 0x514   : > { %v2797_v53 = vpop.eup %2796 }
 0x515   : > { %2798 = vrcp.f32 %v1520_v61  ;;  %v1527_v51 = vadd.f32 1.0, %v2797_v53 }
 0x517   : > { %2800 = vrcp.f32 %v1527_v51 }
 0x522   : > { %v2799_v20 = vpop.eup %2798 }
 0x523   : > { %v1530_v13 = vmul.f32 %v2799_v20, %v1511_v17 }
 0x524   : > { %v2801_v8 = vpop.eup %2800 }
 0x525   : > { %v1531_v54 = vadd.f32 %v1530_v13, %v3279_v0  ;;  %v1533_v57 = vsub.f32 1.0, %v2801_v8  ;;  %v1535_v33 = vmul.f32 %v2801_v8, %v3513_v42 }
 0x527   : > { %2802 = vtanh.f32 %v1531_v54 }
 0x534   : > { %v2803_v27 = vpop.eup %2802 }
 0x535   : > { %v1534_v4 = vmul.f32 %v2803_v27, %v1533_v57 }
 0x537   : > { %v1536_v23 = vadd.f32 %v1535_v33, %v1534_v4  ;;  %v3915_v4 = vld [vmem:[#allocation5_spill] sm:$0xff] }
 0x539   : > { %v1539_v49 = vsel %vm1538_vm6, %v1536_v23, 0.0  ;;  %v3636_v9 = vsel %vm1538_vm6, %v1536_v23, %v3513_v42  ;;  %v3648_v42 = vld [vmem:[%s3894_s4 + $0xb0] ss:$12 sps:$4 sm:$0xff]  }
 0x53a   : > { %v1541_v22 = vcombine.high %v1539_v49, %v1539_v49  ;;  %v1548_v0 = vrot.slane %v1539_v49, %v3316_v1  ;;  %v1608_v10 = vpack.c.bf16 %v3636_v9, %v3636_v9 }
 0x53c   : > { %v1555_v44 = vrot.slane %v1541_v22, %v3316_v1  ;;  %v1556_v26 = vcombine.high %v1548_v0, %v1548_v0  ;;  %v1564_v7 = vrot.slane %v1548_v0, %v3316_v1  ;;  %2390 = vst.sshfl [vmem:[%s2993_s20 + $0x4] sm:$0x1 pattern:$0x73625140] %v1548_v0  ;;  %1642 = vmatmul.mubr.bf16.vlgmr.msra.gmra.mxu0 %v1608_v10 }
 0x53d   : > { %2625 = vmatmul.mubr.bf16.vlgmr.msra.gmra.mxu1 %v1608_v10  ;;  %1784 = vmatpush1.bf16.msra.mxu0 %v3524_v55 }
 0x53e   : > { %2629 = vmatpush3.bf16.msra.mxu1 %v3648_v42  ;;  %v1557_v12 = vcombine.high %v1555_v44, %v1555_v44  ;;  %v1571_v25 = vrot.slane %v1555_v44, %v3316_v1  ;;  %v1578_v18 = vrot.slane %v1556_v26, %v3316_v1  ;;  %v1586_v19 = vcombine.high %v1564_v7, %v1564_v7 }
 0x53f   : > { %2391 = vst.sshfl [vmem:[%s2993_s20 + $0xc] sm:$0x1 pattern:$0x73625140] %v1556_v26  ;;  %1785 = vmatprep.subr.bf16.mxu0 %v3535_v15  ;;  %2630 = vmatprep.subr.bf16.mxu1 %v3913_v3 }
 0x540   : > { %2392 = vst.sshfl [vmem:[%s2993_s20 + $0x24] sm:$0x1 pattern:$0x73625140] %v1555_v44  ;;  %1815 = vmatprep.mubr.bf16.mxu0 %v3914_v48  ;;  %v1585_v24 = vrot.slane %v1557_v12, %v3316_v1  ;;  %v1587_v45 = vcombine.high %v1571_v25, %v1571_v25  ;;  %v1588_v63 = vcombine.high %v1578_v18, %v1578_v18  ;;  %1600 = vst [vmem:[%s2993_s20 + $0x14] sm:$0x1] %v1586_v19 }
 0x541   : > { %2393 = vst.sshfl [vmem:[%s2993_s20 + $0x2c] sm:$0x1 pattern:$0x73625140] %v1557_v12  ;;  %2644 = vmatprep.mubr.msk.bf16.mxu1 %vm2901_vm1, %v3913_v3  ;;  %1786 = vmatpush1.bf16.msra.mxu0 %v3548_v21  ;;  %v3916_v44 = vld [vmem:[#allocation9_spill] sm:$0xff] }
 0x542   : > { %2631 = vmatpush3.bf16.msra.mxu1 %v3667_v16  ;;  %v1589_v58 = vcombine.high %v1585_v24, %v1585_v24  ;;  %1601 = vst [vmem:[%s2993_s20 + $0x1c] sm:$0x1] %v1588_v63  ;;  %1604 = vst [vmem:[%s2993_s20 + $0x34] sm:$0x1] %v1587_v45  ;;  %1787 = vmatprep.subr.bf16.mxu0 %v3557_v28  ;;  %v1711_v24 = vstv %s1607_s14 }
 0x543   : > { %2632 = vmatprep.subr.bf16.mxu1 %v3913_v3  ;;  %vm1712_vm7 = vcmp.lt.s32.totalorder %v1711_v24, %v3310_v32 }
 0x544   : > { %1605 = vst [vmem:[%s2993_s20 + $0x3c] sm:$0x1] %v1589_v58 }
 0x545   : > { %1788 = vmatpush1.bf16.msra.mxu0 %v3565_v29 }
 0x546   : > { %2633 = vmatpush3.bf16.msra.mxu1 %v3679_v38  ;;  %1789 = vmatprep.subr.bf16.mxu0 %v3572_v30 }
 0x547   : > { %2634 = vmatprep.subr.bf16.mxu1 %v3913_v3 }
 0x549   : > { %1790 = vmatpush1.bf16.msra.mxu0 %v3579_v34 }
 0x54a   : > { %2635 = vmatpush3.bf16.msra.mxu1 %v3688_v46  ;;  %1791 = vmatprep.subr.bf16.mxu0 %v3586_v36 }
 0x54b   : > { %2636 = vmatprep.subr.bf16.mxu1 %v3913_v3 }
 0x54d   : > { %1792 = vmatpush1.bf16.msra.mxu0 %v3593_v35 }
 0x54e   : > { %2637 = vmatpush3.bf16.msra.mxu1 %v3697_v50  ;;  %1793 = vmatprep.subr.bf16.mxu0 %v3600_v40 }
 0x54f   : > { %2638 = vmatprep.subr.bf16.mxu1 %v3913_v3 }
 0x551   : > { %1794 = vmatpush1.bf16.msra.mxu0 %v3607_v31 }
 0x552   : > { %2639 = vmatpush3.bf16.msra.mxu1 %v3706_v39  ;;  %1795 = vmatprep.subr.bf16.mxu0 %v3614_v43 }
 0x553   : > { %2640 = vmatprep.subr.bf16.mxu1 %v3913_v3 }
 0x555   : > { %1796 = vmatpush1.bf16.msra.mxu0 %v3714_v62 }
 0x556   : > { %2641 = vmatpush3.bf16.msra.mxu1 %v3720_v56  ;;  %1797 = vmatprep.subr.bf16.mxu0 %v3726_v41 }
 0x557   : > { %2642 = vmatprep.subr.bf16.mxu1 %v3913_v3 }
 0x559   : > { %1798 = vmatpush1.bf16.msra.mxu0 %v3733_v2 }
 0x55a   : > { %2643 = vmatpush3.bf16.msra.mxu1 %v3739_v47  ;;  %1957 = vmatprep.subr.bf16.mxu0 %v3499_v11 }
 0x55b   : > { %2648 = vmatprep.subr.bf16.mxu1 %v3913_v3 }
 0x5fc   : > { %v1643_v5 = vpop.f32.mrf.mxu0 }
 0x5fd   : > { %v1684_v14 = vpop.f32.mrf.mxu1  ;;  %v1644_v61 = vadd.f32 %v1643_v5, %v3296_v59 }
 0x5fe   : > { %v1645_v53 = vpop.f32.mrf.mxu0 }
 0x5ff   : > { %v2626_v51 = vpop.f32.mrf.mxu1  ;;  %v1690_v17 = vadd.f32 %v1644_v61, %v3271_v37  ;;  %v1646_v8 = vadd.f32 %v1645_v53, %v3301_v6  ;;  %v1685_v37 = vadd.f32 %v1684_v14, %v3306_v60 }
 0x600   : > { %v1647_v20 = vpop.f32.mrf.mxu0 }
 0x601   : > { %v1687_v13 = vpop.f32.mrf.mxu1  ;;  %v2394_v54 = vmul.f32 -1.442695, %v1690_v17  ;;  %v1697_v11 = vadd.f32 %v1646_v8, %v3915_v4 }
 0x602   : > { %v1648_v57 = vpop.f32.mrf.mxu0 }
 0x603   : > { %v2627_v27 = vpop.f32.mrf.mxu1  ;;  %2804 = vpow2.f32 %v2394_v54  ;;  %v2395_v33 = vmul.f32 -1.442695, %v1697_v11 }
 0x604   : > { %v3919_v27 = vld [vmem:[#allocation4_spill] sm:$0xff] }
 0x605   : > { %2806 = vpow2.f32 %v2395_v33 }
 0x610   : > { %v2805_v52 = vpop.eup %2804 }
 0x611   : > { %v1694_v23 = vadd.f32 1.0, %v2805_v52 }
 0x612   : > { %v2807_v49 = vpop.eup %2806 }
 0x613   : > { %2808 = vrcp.f32 %v1694_v23  ;;  %v1701_v22 = vadd.f32 1.0, %v2807_v49 }
 0x615   : > { %2810 = vrcp.f32 %v1701_v22  ;;  %v1885_v22 = vstv %s1781_s15 }
 0x616   : > { %vm1886_vm8 = vcmp.lt.s32.totalorder %v1885_v22, %v3310_v32 }
 0x620   : > { %v2809_v0 = vpop.eup %2808 }
 0x621   : > { %v1704_v10 = vmul.f32 %v2809_v0, %v1685_v37 }
 0x622   : > { %v2811_v7 = vpop.eup %2810 }
 0x623   : > { %v1705_v26 = vadd.f32 %v1704_v10, %v3916_v44  ;;  %v1707_v12 = vsub.f32 1.0, %v2811_v7  ;;  %v1709_v19 = vmul.f32 %v2811_v7, %v3636_v9 }
 0x625   : > { %2812 = vtanh.f32 %v1705_v26 }
 0x632   : > { %v2813_v25 = vpop.eup %2812 }
 0x633   : > { %v1708_v18 = vmul.f32 %v2813_v25, %v1707_v12 }
 0x635   : > { %v1710_v45 = vadd.f32 %v1709_v19, %v1708_v18 }
 0x637   : > { %v1713_v63 = vsel %vm1712_vm7, %v1710_v45, 0.0  ;;  %v3754_v58 = vsel %vm1712_vm7, %v1710_v45, %v3636_v9 }
 0x638   : > { %v1715_v5 = vcombine.high %v1713_v63, %v1713_v63  ;;  %v1722_v14 = vrot.slane %v1713_v63, %v3316_v1  ;;  %v1782_v61 = vpack.c.bf16 %v3754_v58, %v3754_v58 }
 0x63a   : > { %v1729_v53 = vrot.slane %v1715_v5, %v3316_v1  ;;  %v1730_v51 = vcombine.high %v1722_v14, %v1722_v14  ;;  %v1738_v17 = vrot.slane %v1722_v14, %v3316_v1  ;;  %2396 = vst.sshfl [vmem:[%s2993_s20 + $0x5] sm:$0x1 pattern:$0x73625140] %v1722_v14  ;;  %1816 = vmatmul.mubr.bf16.vlgmr.msra.gmra.mxu0 %v1782_v61 }
 0x63b   : > { %2645 = vmatmul.mubr.bf16.vlgmr.msra.gmra.mxu1 %v1782_v61  ;;  %1958 = vmatpush1.bf16.msra.mxu0 %v3524_v55 }
 0x63c   : > { %2649 = vmatpush3.bf16.msra.mxu1 %v3648_v42  ;;  %v1731_v9 = vcombine.high %v1729_v53, %v1729_v53  ;;  %v1745_v20 = vrot.slane %v1729_v53, %v3316_v1  ;;  %v1752_v13 = vrot.slane %v1730_v51, %v3316_v1  ;;  %v1760_v54 = vcombine.high %v1738_v17, %v1738_v17 }
 0x63d   : > { %2397 = vst.sshfl [vmem:[%s2993_s20 + $0xd] sm:$0x1 pattern:$0x73625140] %v1730_v51  ;;  %1959 = vmatprep.subr.bf16.mxu0 %v3535_v15  ;;  %2650 = vmatprep.subr.bf16.mxu1 %v3913_v3 }
 0x63e   : > { %2398 = vst.sshfl [vmem:[%s2993_s20 + $0x25] sm:$0x1 pattern:$0x73625140] %v1729_v53  ;;  %1989 = vmatprep.mubr.bf16.mxu0 %v3914_v48  ;;  %v1759_v55 = vrot.slane %v1731_v9, %v3316_v1  ;;  %v1761_v42 = vcombine.high %v1745_v20, %v1745_v20  ;;  %v1762_v8 = vcombine.high %v1752_v13, %v1752_v13  ;;  %1774 = vst [vmem:[%s2993_s20 + $0x15] sm:$0x1] %v1760_v54 }
 0x63f   : > { %2399 = vst.sshfl [vmem:[%s2993_s20 + $0x2d] sm:$0x1 pattern:$0x73625140] %v1731_v9  ;;  %2664 = vmatprep.mubr.msk.bf16.mxu1 %vm2901_vm1, %v3913_v3  ;;  %1960 = vmatpush1.bf16.msra.mxu0 %v3548_v21  ;;  %v3920_v13 = vld [vmem:[#allocation10_spill] sm:$0xff] }
 0x640   : > { %2651 = vmatpush3.bf16.msra.mxu1 %v3667_v16  ;;  %v1763_v57 = vcombine.high %v1759_v55, %v1759_v55  ;;  %1775 = vst [vmem:[%s2993_s20 + $0x1d] sm:$0x1] %v1762_v8  ;;  %1778 = vst [vmem:[%s2993_s20 + $0x35] sm:$0x1] %v1761_v42  ;;  %1961 = vmatprep.subr.bf16.mxu0 %v3557_v28 }
 0x641   : > { %2652 = vmatprep.subr.bf16.mxu1 %v3913_v3 }
 0x642   : > { %1779 = vst [vmem:[%s2993_s20 + $0x3d] sm:$0x1] %v1763_v57 }
 0x643   : > { %1962 = vmatpush1.bf16.msra.mxu0 %v3565_v29 }
 0x644   : > { %2653 = vmatpush3.bf16.msra.mxu1 %v3679_v38  ;;  %1963 = vmatprep.subr.bf16.mxu0 %v3572_v30  ;;  %v3917_v30 = vld [vmem:[#allocation6_spill] sm:$0xff] }
 0x645   : > { %2654 = vmatprep.subr.bf16.mxu1 %v3913_v3 }
 0x647   : > { %1964 = vmatpush1.bf16.msra.mxu0 %v3579_v34 }
 0x648   : > { %2655 = vmatpush3.bf16.msra.mxu1 %v3688_v46  ;;  %1965 = vmatprep.subr.bf16.mxu0 %v3586_v36 }
 0x649   : > { %2656 = vmatprep.subr.bf16.mxu1 %v3913_v3 }
 0x64b   : > { %1966 = vmatpush1.bf16.msra.mxu0 %v3593_v35 }
 0x64c   : > { %2657 = vmatpush3.bf16.msra.mxu1 %v3697_v50  ;;  %1967 = vmatprep.subr.bf16.mxu0 %v3600_v40 }
 0x64d   : > { %2658 = vmatprep.subr.bf16.mxu1 %v3913_v3 }
 0x64f   : > { %1968 = vmatpush1.bf16.msra.mxu0 %v3607_v31 }
 0x650   : > { %2659 = vmatpush3.bf16.msra.mxu1 %v3706_v39  ;;  %1969 = vmatprep.subr.bf16.mxu0 %v3614_v43 }
 0x651   : > { %2660 = vmatprep.subr.bf16.mxu1 %v3913_v3 }
 0x653   : > { %1970 = vmatpush1.bf16.msra.mxu0 %v3714_v62 }
 0x654   : > { %2661 = vmatpush3.bf16.msra.mxu1 %v3720_v56  ;;  %1971 = vmatprep.subr.bf16.mxu0 %v3726_v41 }
 0x655   : > { %2662 = vmatprep.subr.bf16.mxu1 %v3913_v3  ;;  %v3918_v3 = vld [vmem:[#allocation8_spill] sm:$0xff] }
 0x657   : > { %1972 = vmatpush1.bf16.msra.mxu0 %v3733_v2 }
 0x658   : > { %2663 = vmatpush3.bf16.msra.mxu1 %v3739_v47 }
 0x6fa   : > { %v1817_v48 = vpop.f32.mrf.mxu0 }
 0x6fb   : > { %v1858_v15 = vpop.f32.mrf.mxu1  ;;  %v1818_v21 = vadd.f32 %v1817_v48, %v3296_v59 }
 0x6fc   : > { %v1819_v28 = vpop.f32.mrf.mxu0  ;;  %v1859_v41 = vadd.f32 %v1858_v15, %v3306_v60 }
 0x6fd   : > { %v2646_v29 = vpop.f32.mrf.mxu1  ;;  %v1864_v34 = vadd.f32 %v1818_v21, %v3917_v30  ;;  %v1820_v31 = vadd.f32 %v1819_v28, %v3301_v6  ;;  %v3921_v21 = vld [vmem:[#allocation11_spill] sm:$0xff] }
 0x6fe   : > { %v1821_v36 = vpop.f32.mrf.mxu0 }
 0x6ff   : > { %v1861_v35 = vpop.f32.mrf.mxu1  ;;  %v2400_v40 = vmul.f32 -1.442695, %v1864_v34  ;;  %v1871_v38 = vadd.f32 %v1820_v31, %v3918_v3 }
 0x700   : > { %v1822_v43 = vpop.f32.mrf.mxu0 }
 0x701   : > { %v2647_v16 = vpop.f32.mrf.mxu1  ;;  %2814 = vpow2.f32 %v2400_v40  ;;  %v2401_v46 = vmul.f32 -1.442695, %v1871_v38  ;;  %v3922_v43 = vld [vmem:[#allocation7_spill] sm:$0xff] }
 0x703   : > { %2816 = vpow2.f32 %v2401_v46  ;;  %v2059_v46 = vstv %s1955_s16 }
 0x704   : > { %vm2060_vm9 = vcmp.lt.s32.totalorder %v2059_v46, %v3310_v32 }
 0x70e   : > { %v2815_v50 = vpop.eup %2814 }
 0x70f   : > { %v1868_v39 = vadd.f32 1.0, %v2815_v50 }
 0x710   : > { %v2817_v62 = vpop.eup %2816 }
 0x711   : > { %2818 = vrcp.f32 %v1868_v39  ;;  %v1875_v56 = vadd.f32 1.0, %v2817_v62 }
 0x713   : > { %2820 = vrcp.f32 %v1875_v56 }
 0x71e   : > { %v2819_v2 = vpop.eup %2818 }
 0x71f   : > { %v1878_v47 = vmul.f32 %v2819_v2, %v1859_v41 }
 0x720   : > { %v2821_v11 = vpop.eup %2820 }
 0x721   : > { %v1879_v4 = vadd.f32 %v1878_v47, %v3919_v27  ;;  %v1881_v33 = vsub.f32 1.0, %v2821_v11  ;;  %v1883_v49 = vmul.f32 %v2821_v11, %v3754_v58 }
 0x723   : > { %2822 = vtanh.f32 %v1879_v4 }
 0x730   : > { %v2823_v52 = vpop.eup %2822 }
 0x731   : > { %v1882_v23 = vmul.f32 %v2823_v52, %v1881_v33 }
 0x733   : > { %v1884_v37 = vadd.f32 %v1883_v49, %v1882_v23 }
 0x735   : > { %v1887_v0 = vsel %vm1886_vm8, %v1884_v37, 0.0  ;;  %v3815_v10 = vsel %vm1886_vm8, %v1884_v37, %v3754_v58 }
 0x736   : > { %v1889_v44 = vcombine.high %v1887_v0, %v1887_v0  ;;  %v1896_v26 = vrot.slane %v1887_v0, %v3316_v1  ;;  %v1956_v7 = vpack.c.bf16 %v3815_v10, %v3815_v10 }
 0x738   : > { %v1903_v12 = vrot.slane %v1889_v44, %v3316_v1  ;;  %v1904_v25 = vcombine.high %v1896_v26, %v1896_v26  ;;  %v1912_v18 = vrot.slane %v1896_v26, %v3316_v1  ;;  %2402 = vst.sshfl [vmem:[%s2993_s20 + $0x6] sm:$0x1 pattern:$0x73625140] %v1896_v26  ;;  %1990 = vmatmul.mubr.bf16.vlgmr.msra.gmra.mxu0 %v1956_v7 }
 0x739   : > { %2665 = vmatmul.mubr.bf16.vlgmr.msra.gmra.mxu1 %v1956_v7 }
 0x73a   : > { %v1905_v19 = vcombine.high %v1903_v12, %v1903_v12  ;;  %v1919_v24 = vrot.slane %v1903_v12, %v3316_v1  ;;  %v1926_v45 = vrot.slane %v1904_v25, %v3316_v1  ;;  %v1934_v63 = vcombine.high %v1912_v18, %v1912_v18  ;;  %2403 = vst.sshfl [vmem:[%s2993_s20 + $0xe] sm:$0x1 pattern:$0x73625140] %v1904_v25 }
 0x73b   : > { %2404 = vst.sshfl [vmem:[%s2993_s20 + $0x26] sm:$0x1 pattern:$0x73625140] %v1903_v12 }
 0x73c   : > { %v1933_v58 = vrot.slane %v1905_v19, %v3316_v1  ;;  %v1935_v5 = vcombine.high %v1919_v24, %v1919_v24  ;;  %v1936_v14 = vcombine.high %v1926_v45, %v1926_v45  ;;  %1948 = vst [vmem:[%s2993_s20 + $0x16] sm:$0x1] %v1934_v63  ;;  %2405 = vst.sshfl [vmem:[%s2993_s20 + $0x2e] sm:$0x1 pattern:$0x73625140] %v1905_v19 }
 0x73e   : > { %v1937_v61 = vcombine.high %v1933_v58, %v1933_v58  ;;  %1949 = vst [vmem:[%s2993_s20 + $0x1e] sm:$0x1] %v1936_v14  ;;  %1952 = vst [vmem:[%s2993_s20 + $0x36] sm:$0x1] %v1935_v5 }
 0x740   : > { %1953 = vst [vmem:[%s2993_s20 + $0x3e] sm:$0x1] %v1937_v61 }
 0x7f8   : > { %v1991_v53 = vpop.f32.mrf.mxu0 }
 0x7f9   : > { %v2032_v51 = vpop.f32.mrf.mxu1  ;;  %v1992_v17 = vadd.f32 %v1991_v53, %v3296_v59 }
 0x7fa   : > { %v1993_v9 = vpop.f32.mrf.mxu0  ;;  %v2033_v35 = vadd.f32 %v2032_v51, %v3306_v60 }
 0x7fb   : > { %v2666_v20 = vpop.f32.mrf.mxu1  ;;  %v2038_v54 = vadd.f32 %v1992_v17, %v3920_v13  ;;  %v1994_v57 = vadd.f32 %v1993_v9, %v3301_v6 }
 0x7fc   : > { %v1995_v55 = vpop.f32.mrf.mxu0 }
 0x7fd   : > { %v2035_v42 = vpop.f32.mrf.mxu1  ;;  %v2406_v8 = vmul.f32 -1.442695, %v2038_v54  ;;  %v2045_v28 = vadd.f32 %v1994_v57, %v3921_v21 }
 0x7fe   : > { %v1996_v48 = vpop.f32.mrf.mxu0 }
 0x7ff   : > { %v2667_v15 = vpop.f32.mrf.mxu1  ;;  %2824 = vpow2.f32 %v2406_v8  ;;  %v2407_v29 = vmul.f32 -1.442695, %v2045_v28 }
 0x801   : > { %2826 = vpow2.f32 %v2407_v29 }
 0x80c   : > { %v2825_v30 = vpop.eup %2824 }
 0x80d   : > { %v2042_v34 = vadd.f32 1.0, %v2825_v30 }
 0x80e   : > { %v2827_v59 = vpop.eup %2826 }
 0x80f   : > { %2828 = vrcp.f32 %v2042_v34  ;;  %v2049_v36 = vadd.f32 1.0, %v2827_v59 }
 0x811   : > { %2830 = vrcp.f32 %v2049_v36 }
 0x81c   : > { %v2829_v40 = vpop.eup %2828 }
 0x81d   : > { %v2052_v31 = vmul.f32 %v2829_v40, %v2033_v35 }
 0x81e   : > { %v2831_v16 = vpop.eup %2830 }
 0x81f   : > { %v2053_v6 = vadd.f32 %v2052_v31, %v3922_v43  ;;  %v2055_v3 = vsub.f32 1.0, %v2831_v16  ;;  %v2057_v39 = vmul.f32 %v2831_v16, %v3815_v10 }
 0x821   : > { %2832 = vtanh.f32 %v2053_v6 }
 0x82e   : > { %v2833_v38 = vpop.eup %2832 }
 0x82f   : > { %v2056_v50 = vmul.f32 %v2833_v38, %v2055_v3 }
 0x831   : > { %v2058_v62 = vadd.f32 %v2057_v39, %v2056_v50 }
 0x833   : > { %v2061_v60 = vsel %vm2060_vm9, %v2058_v62, 0.0  ;;  %v2128_v56 = vsel %vm2060_vm9, %v2058_v62, %v3815_v10 }
 0x834   : > { %v2063_v41 = vcombine.high %v2061_v60, %v2061_v60  ;;  %v2070_v2 = vrot.slane %v2061_v60, %v3316_v1  ;;  %2129 = vst [vmem:[#allocation2] sm:$0xff] %v2128_v56 }
 0x836   : > { %v2077_v47 = vrot.slane %v2063_v41, %v3316_v1  ;;  %v2078_v27 = vcombine.high %v2070_v2, %v2070_v2  ;;  %v2086_v4 = vrot.slane %v2070_v2, %v3316_v1  ;;  %2408 = vst.sshfl [vmem:[%s2993_s20 + $0x7] sm:$0x1 pattern:$0x73625140] %v2070_v2 }
 0x838   : > { %v2079_v11 = vcombine.high %v2077_v47, %v2077_v47  ;;  %v2093_v32 = vrot.slane %v2077_v47, %v3316_v1  ;;  %v2100_v33 = vrot.slane %v2078_v27, %v3316_v1  ;;  %v2108_v52 = vcombine.high %v2086_v4, %v2086_v4  ;;  %2409 = vst.sshfl [vmem:[%s2993_s20 + $0xf] sm:$0x1 pattern:$0x73625140] %v2078_v27 }
 0x839   : > { %2410 = vst.sshfl [vmem:[%s2993_s20 + $0x27] sm:$0x1 pattern:$0x73625140] %v2077_v47 }
 0x83a   : > { %v2107_v23 = vrot.slane %v2079_v11, %v3316_v1  ;;  %v2109_v49 = vcombine.high %v2093_v32, %v2093_v32  ;;  %v2110_v22 = vcombine.high %v2100_v33, %v2100_v33  ;;  %2122 = vst [vmem:[%s2993_s20 + $0x17] sm:$0x1] %v2108_v52  ;;  %2411 = vst.sshfl [vmem:[%s2993_s20 + $0x2f] sm:$0x1 pattern:$0x73625140] %v2079_v11 }
 0x83b   : > { %2133 = sbr.rel (%p2412_p10) target bundleno = 2113 (0x841), region = 52 }
 0x83c   : > { %v2111_v37 = vcombine.high %v2107_v23, %v2107_v23  ;;  %2123 = vst [vmem:[%s2993_s20 + $0x1f] sm:$0x1] %v2110_v22  ;;  %2126 = vst [vmem:[%s2993_s20 + $0x37] sm:$0x1] %v2109_v49 }
 0x83e   : > { %2127 = vst [vmem:[%s2993_s20 + $0x3f] sm:$0x1] %v2111_v37 }
 0x840   : > { %2134 = vst [vmem:[%s3897_s7] sm:$0xff] %v2128_v56 }
 0x841 PF: > { %2145 = sbr.rel (!%p2972_p3) target bundleno = 2120 (0x848), region = 56  ;;  %s2150_s26 = scalar_lea.vmem (%p2972_p3), %s3896_s6, %s2984_s13  ;;  %v2193_v1 = vld [vmem:[%s2993_s20] sm:$0xff] (%p2972_p3)  ;;  %v2195_v0 = vld [vmem:[%s2993_s20 + $0x8] sm:$0xff] (%p2972_p3) }
 0x842   : > { %v2197_v10 = vld [vmem:[%s2993_s20 + $0x10] sm:$0xff] (%p2972_p3)  ;;  %2194 = vst [vmem:[%s2150_s26] sm:$0xff] (%p2972_p3), %v2193_v1  ;;  %2196 = vst [vmem:[%s2150_s26 + $0x10] sm:$0xff] (%p2972_p3), %v2195_v0  ;;  %v2201_v26 = vld [vmem:[%s2993_s20 + $0x20] sm:$0xff] (%p2972_p3) }
 0x843   : > { %2198 = vst [vmem:[%s2150_s26 + $0x20] sm:$0xff] (%p2972_p3), %v2197_v10  ;;  %v2203_v7 = vld [vmem:[%s2993_s20 + $0x28] sm:$0xff] (%p2972_p3)  ;;  %2202 = vst [vmem:[%s2150_s26 + $0x40] sm:$0xff] (%p2972_p3), %v2201_v26 }
 0x844   : > { %v2199_v44 = vld [vmem:[%s2993_s20 + $0x18] sm:$0xff] (%p2972_p3)  ;;  %2204 = vst [vmem:[%s2150_s26 + $0x50] sm:$0xff] (%p2972_p3), %v2203_v7  ;;  %v2205_v12 = vld [vmem:[%s2993_s20 + $0x30] sm:$0xff] (%p2972_p3) }
 0x845   : > { %2200 = vst [vmem:[%s2150_s26 + $0x30] sm:$0xff] (%p2972_p3), %v2199_v44  ;;  %2206 = vst [vmem:[%s2150_s26 + $0x60] sm:$0xff] (%p2972_p3), %v2205_v12 }
 0x846   : > { %v2207_v25 = vld [vmem:[%s2993_s20 + $0x38] sm:$0xff] }
 0x847   : > { %2208 = vst [vmem:[%s2150_s26 + $0x70] sm:$0xff] %v2207_v25 }
 0x848 PF: > { %s18_s28 = sadd.s32 1, %s2896_s28   ;;  %s3923_s24 = smov %s2884_s25 }
 0x849   : > { %p15_p11 = scmp.ge.s32.totalorder %s18_s28, 4   ;;  %s3924_s25 = smov %s2981_s11 }
 0x84a   : > { %s3925_s26 = smov %s2892_s27  ;;  %s3926_s27 = smov %s3928_s30 }
 0x84b   :  { %17 = sbr.rel (!%p15_p11) target bundleno = 3 (0x3), region = 135 }

</bundles_post_ra>
